<compile_context>
chip_gen: v6e
topology: v6e:2x2x1
jax: 0.10.0
libtpu: 0.0.40
codegen_flags: <defaults>
</compile_context>

<pallas_src>
import functools

import jax
import jax.numpy as jnp
from jax.experimental import pallas as pl
from jax.experimental.pallas import tpu as pltpu

HIDDEN_SIZE = 64
INPUT_SIZE = 30
NUM_LAYERS = 2
OUTPUT_SEQ_LENGTH = 12
OUTPUT_SIZE = 30


def _lstm_fc_kernel(x_ref,                      # (T*B, I)  flattened time-major input
                    wx0_ref, wh0_ref, b0_ref,   # layer 0: (I, 4H), (H, 4H), (1, 4H)
                    wx1_ref, wh1_ref, b1_ref,   # layer 1: (H, 4H), (H, 4H), (1, 4H)
                    wfc_ref, bfc_ref,           # fc head: (H, O), (1, O)
                    out_ref):                   # (B, O)
    TB = x_ref.shape[0]
    B = out_ref.shape[0]
    T = TB // B
    H = wh0_ref.shape[0]

    # Tiny weights: load once, they stay VMEM/vreg resident across the
    # unrolled loop.
    wh0 = wh0_ref[...]
    wx1 = wx1_ref[...]
    wh1 = wh1_ref[...]
    b1 = b1_ref[...]

    # Hoisted layer-0 input projections for every timestep in one matmul
    # (off the recurrence critical path); bias b0 folded in once here.
    x_gates = jnp.dot(x_ref[...], wx0_ref[...],
                      preferred_element_type=jnp.float32) + b0_ref[...]

    def activate(gates, c):
        # PyTorch gate order: i, f, g, o.
        # TODO(synk): 64-lane gate slices cost a small lane relayout; could be
        # removed by padding each gate to a full 128-lane group, but at B=2 it
        # is low single-digit % and adds MXU work.
        i = jax.nn.sigmoid(gates[:, 0 * H:1 * H])
        f = jax.nn.sigmoid(gates[:, 1 * H:2 * H])
        g = jnp.tanh(gates[:, 2 * H:3 * H])
        o = jax.nn.sigmoid(gates[:, 3 * H:4 * H])
        c_new = f * c + i * g
        h_new = o * jnp.tanh(c_new)
        return h_new, c_new

    zeros = jnp.zeros((B, H), jnp.float32)
    h0, c0, h1, c1 = zeros, zeros, zeros, zeros

    # Fully-unrolled static time loop; h/c never touch VMEM.
    for t in range(T):
        # Layer-1 recurrent half: depends only on the previous step's h1, so
        # it can be issued/overlapped with the layer-0 cell below.
        g1_rec = jnp.dot(h1, wh1, preferred_element_type=jnp.float32) + b1

        # Layer 0: recurrent matmul + precomputed input projection.
        g0 = x_gates[t * B:(t + 1) * B, :] + jnp.dot(
            h0, wh0, preferred_element_type=jnp.float32)
        h0, c0 = activate(g0, c0)

        # Layer 1: add the freshly-computed h0 projection.
        g1 = g1_rec + jnp.dot(h0, wx1, preferred_element_type=jnp.float32)
        h1, c1 = activate(g1, c1)

    # FC head on the final layer-1 hidden state.
    out_ref[...] = (jnp.dot(h1, wfc_ref[...], preferred_element_type=jnp.float32)
                    + bfc_ref[...])


@functools.partial(jax.jit, static_argnames=("output_seq_length", "output_size"))
def rnn_model_forward(x, params, *, output_seq_length=OUTPUT_SEQ_LENGTH,
                      output_size=OUTPUT_SIZE):
    """x: (B, T, input_size) float32 -> (B, output_seq_length, output_size)."""
    B, T, I = x.shape
    H = params["whh0"].shape[1]           # hidden size
    O = output_seq_length * output_size   # fc out features

    # Time-major then flatten so the layer-0 input projection is one big
    # (T*B, I) matmul inside the kernel.
    x_flat = jnp.transpose(x, (1, 0, 2)).reshape(T * B, I)

    wx0 = params["wih0"].T                               # (I, 4H)
    wh0 = params["whh0"].T                               # (H, 4H)
    b0 = (params["bih0"] + params["bhh0"]).reshape(1, 4 * H)
    wx1 = params["wih1"].T                               # (H, 4H)
    wh1 = params["whh1"].T                               # (H, 4H)
    b1 = (params["bih1"] + params["bhh1"]).reshape(1, 4 * H)
    wfc = params["wfc"].T                                # (H, O)
    bfc = params["bfc"].reshape(1, O)

    full = lambda shape: pl.BlockSpec(shape, lambda i: (0,) * len(shape))

    # Advisory cost hint so XLA schedules neighbouring ops sensibly.
    flops = (2 * T * B * I * 4 * H            # hoisted input projection
             + 2 * T * B * H * 4 * H          # layer-0 recurrent matmuls
             + 2 * T * B * (2 * H) * 4 * H    # layer-1 matmuls
             + 2 * B * H * O)                 # fc head
    transcendentals = T * NUM_LAYERS * 5 * B * H   # 3 sigmoid + 2 tanh per cell
    bytes_accessed = 4 * (x_flat.size + wx0.size + wh0.size + b0.size
                          + wx1.size + wh1.size + b1.size
                          + wfc.size + bfc.size + B * O)
    cost = pl.CostEstimate(flops=flops, transcendentals=transcendentals,
                           bytes_accessed=bytes_accessed)

    out = pl.pallas_call(
        _lstm_fc_kernel,
        out_shape=jax.ShapeDtypeStruct((B, O), jnp.float32),
        grid_spec=pltpu.PrefetchScalarGridSpec(
            num_scalar_prefetch=0,
            grid=(1,),                       # single invocation; time loop is in-kernel
            in_specs=[
                full((T * B, I)),            # whole input in one tiny copy
                full((I, 4 * H)),
                full((H, 4 * H)),
                full((1, 4 * H)),
                full((H, 4 * H)),
                full((H, 4 * H)),
                full((1, 4 * H)),
                full((H, O)),
                full((1, O)),
            ],
            out_specs=pl.BlockSpec((B, O), lambda i: (0, 0)),
        ),
        compiler_params=pltpu.CompilerParams(
            dimension_semantics=("arbitrary",)),
        cost_estimate=cost,
    )(x_flat, wx0, wh0, b0, wx1, wh1, b1, wfc, bfc)

    return out.reshape(B, output_seq_length, output_size)


def init_params(key, input_size, hidden_size, output_size, output_seq_length):
    """Deterministic init matching PyTorch layouts/shapes (uniform +-1/sqrt(H))."""
    H, I = hidden_size, input_size
    O = output_size * output_seq_length
    k_lstm = 1.0 / jnp.sqrt(jnp.float32(H))
    k_fc = 1.0 / jnp.sqrt(jnp.float32(H))
    keys = jax.random.split(key, 10)
    u = lambda k, shape, b: jax.random.uniform(k, shape, jnp.float32, -b, b)
    return {
        # layer 0
        "wih0": u(keys[0], (4 * H, I), k_lstm),
        "whh0": u(keys[1], (4 * H, H), k_lstm),
        "bih0": u(keys[2], (4 * H,), k_lstm),
        "bhh0": u(keys[3], (4 * H,), k_lstm),
        # layer 1
        "wih1": u(keys[4], (4 * H, H), k_lstm),
        "whh1": u(keys[5], (4 * H, H), k_lstm),
        "bih1": u(keys[6], (4 * H,), k_lstm),
        "bhh1": u(keys[7], (4 * H,), k_lstm),
        # fc head
        "wfc": u(keys[8], (O, H), k_fc),
        "bfc": u(keys[9], (O,), k_fc),
    }


def _reference_forward(x, params):
    """Pure-JAX reference (same math as torch.nn.LSTM + Linear) for checking."""
    B, T, I = x.shape
    H = params["whh0"].shape[1]

    def cell(x_in, h, c, wih, whh, bih, bhh):
        gates = x_in @ wih.T + h @ whh.T + bih + bhh
        i = jax.nn.sigmoid(gates[:, 0 * H:1 * H])
        f = jax.nn.sigmoid(gates[:, 1 * H:2 * H])
        g = jnp.tanh(gates[:, 2 * H:3 * H])
        o = jax.nn.sigmoid(gates[:, 3 * H:4 * H])
        c = f * c + i * g
        h = o * jnp.tanh(c)
        return h, c

    h0 = c0 = h1 = c1 = jnp.zeros((B, H), jnp.float32)
    for t in range(T):
        h0, c0 = cell(x[:, t, :], h0, c0, params["wih0"], params["whh0"],
                      params["bih0"], params["bhh0"])
        h1, c1 = cell(h0, h1, c1, params["wih1"], params["whh1"],
                      params["bih1"], params["bhh1"])
    out = h1 @ params["wfc"].T + params["bfc"]
    return out.reshape(B, OUTPUT_SEQ_LENGTH, OUTPUT_SIZE)


if __name__ == "__main__":
    key = jax.random.PRNGKey(0)
    k_params, k_x = jax.random.split(key)

    B, T = 2, 8
    params = init_params(k_params, INPUT_SIZE, HIDDEN_SIZE,
                         OUTPUT_SIZE, OUTPUT_SEQ_LENGTH)
    x = jax.random.normal(k_x, (B, T, INPUT_SIZE), jnp.float32)

    out = rnn_model_forward(x, params)
    out = jax.block_until_ready(out)
    assert out.shape == (B, OUTPUT_SEQ_LENGTH, OUTPUT_SIZE), out.shape

    ref = _reference_forward(x, params)
    assert jnp.allclose(out, ref, atol=1e-4, rtol=1e-4), (
        float(jnp.max(jnp.abs(out - ref))))

    print("KERNEL_OK")
</pallas_src>

<mosaic_0001>
module attributes {stable_mosaic.version = 11 : i64} {
  func.func @_lstm_fc_kernel(%arg0: i32, %arg1: memref<16x30xf32, #tpu.memory_space<vmem>>, %arg2: memref<30x256xf32, #tpu.memory_space<vmem>>, %arg3: memref<64x256xf32, #tpu.memory_space<vmem>>, %arg4: memref<1x256xf32, #tpu.memory_space<vmem>>, %arg5: memref<64x256xf32, #tpu.memory_space<vmem>>, %arg6: memref<64x256xf32, #tpu.memory_space<vmem>>, %arg7: memref<1x256xf32, #tpu.memory_space<vmem>>, %arg8: memref<64x360xf32, #tpu.memory_space<vmem>>, %arg9: memref<1x360xf32, #tpu.memory_space<vmem>>, %arg10: memref<2x360xf32, #tpu.memory_space<vmem>>) attributes {dimension_semantics = [#tpu.dimension_semantics<arbitrary>], iteration_bounds = array<i64: 1>, scalar_prefetch = 0 : i64, scratch_operands = 0 : i64, tpu.core_type = #tpu.core_type<tc>, window_params = [{pipeline_mode = #tpu.pipeline_mode<synchronous>, transform_indices = @transform_0, window_bounds = array<i64: 16, 30>}, {pipeline_mode = #tpu.pipeline_mode<synchronous>, transform_indices = @transform_1, window_bounds = array<i64: 30, 256>}, {pipeline_mode = #tpu.pipeline_mode<synchronous>, transform_indices = @transform_2, window_bounds = array<i64: 64, 256>}, {pipeline_mode = #tpu.pipeline_mode<synchronous>, transform_indices = @transform_3, window_bounds = array<i64: 1, 256>}, {pipeline_mode = #tpu.pipeline_mode<synchronous>, transform_indices = @transform_4, window_bounds = array<i64: 64, 256>}, {pipeline_mode = #tpu.pipeline_mode<synchronous>, transform_indices = @transform_5, window_bounds = array<i64: 64, 256>}, {pipeline_mode = #tpu.pipeline_mode<synchronous>, transform_indices = @transform_6, window_bounds = array<i64: 1, 256>}, {pipeline_mode = #tpu.pipeline_mode<synchronous>, transform_indices = @transform_7, window_bounds = array<i64: 64, 360>}, {pipeline_mode = #tpu.pipeline_mode<synchronous>, transform_indices = @transform_8, window_bounds = array<i64: 1, 360>}, {pipeline_mode = #tpu.pipeline_mode<synchronous>, transform_indices = @transform_9, window_bounds = array<i64: 2, 360>}]} {
    %c0 = arith.constant 0 : index
    %c0_0 = arith.constant 0 : index
    %0 = vector.load %arg3[%c0, %c0_0] : memref<64x256xf32, #tpu.memory_space<vmem>>, vector<64x256xf32>
    %c0_1 = arith.constant 0 : index
    %c0_2 = arith.constant 0 : index
    %1 = vector.load %arg5[%c0_1, %c0_2] : memref<64x256xf32, #tpu.memory_space<vmem>>, vector<64x256xf32>
    %c0_3 = arith.constant 0 : index
    %c0_4 = arith.constant 0 : index
    %2 = vector.load %arg6[%c0_3, %c0_4] : memref<64x256xf32, #tpu.memory_space<vmem>>, vector<64x256xf32>
    %c0_5 = arith.constant 0 : index
    %c0_6 = arith.constant 0 : index
    %3 = vector.load %arg7[%c0_5, %c0_6] : memref<1x256xf32, #tpu.memory_space<vmem>>, vector<1x256xf32>
    %c0_7 = arith.constant 0 : index
    %c0_8 = arith.constant 0 : index
    %4 = vector.load %arg1[%c0_7, %c0_8] : memref<16x30xf32, #tpu.memory_space<vmem>>, vector<16x30xf32>
    %c0_9 = arith.constant 0 : index
    %c0_10 = arith.constant 0 : index
    %5 = vector.load %arg2[%c0_9, %c0_10] : memref<30x256xf32, #tpu.memory_space<vmem>>, vector<30x256xf32>
    %cst = arith.constant dense<0.000000e+00> : vector<16x256xf32>
    %6 = tpu.matmul %4, %5, %cst {dimension_numbers = #tpu.dot_dimension_numbers<[1], [0], [0], [1], [0, 0, 1, 1], [], []>} : vector<16x30xf32>, vector<30x256xf32>, vector<16x256xf32> -> vector<16x256xf32>
    %c0_11 = arith.constant 0 : index
    %c0_12 = arith.constant 0 : index
    %7 = vector.load %arg4[%c0_11, %c0_12] : memref<1x256xf32, #tpu.memory_space<vmem>>, vector<1x256xf32>
    %8 = vector.broadcast %7 : vector<1x256xf32> to vector<16x256xf32>
    %9 = arith.addf %6, %8 : vector<16x256xf32>
    %cst_13 = arith.constant 0.000000e+00 : f32
    %10 = vector.broadcast %cst_13 : f32 to vector<2x64xf32>
    %cst_14 = arith.constant dense<0.000000e+00> : vector<2x256xf32>
    %11 = tpu.matmul %10, %2, %cst_14 {dimension_numbers = #tpu.dot_dimension_numbers<[1], [0], [0], [1], [0, 0, 1, 1], [], []>} : vector<2x64xf32>, vector<64x256xf32>, vector<2x256xf32> -> vector<2x256xf32>
    %12 = vector.broadcast %3 : vector<1x256xf32> to vector<2x256xf32>
    %13 = arith.addf %11, %12 : vector<2x256xf32>
    %14 = vector.extract_strided_slice %9 {offsets = [0, 0], sizes = [2, 256], strides = [1, 1]} : vector<16x256xf32> to vector<2x256xf32>
    %cst_15 = arith.constant dense<0.000000e+00> : vector<2x256xf32>
    %15 = tpu.matmul %10, %0, %cst_15 {dimension_numbers = #tpu.dot_dimension_numbers<[1], [0], [0], [1], [0, 0, 1, 1], [], []>} : vector<2x64xf32>, vector<64x256xf32>, vector<2x256xf32> -> vector<2x256xf32>
    %16 = arith.addf %14, %15 : vector<2x256xf32>
    %17 = vector.extract_strided_slice %16 {offsets = [0, 0], sizes = [2, 64], strides = [1, 1]} : vector<2x256xf32> to vector<2x64xf32>
    %18 = arith.negf %17 : vector<2x64xf32>
    %19 = math.exp %18 : vector<2x64xf32>
    %cst_16 = arith.constant 1.000000e+00 : f32
    %20 = vector.broadcast %cst_16 : f32 to vector<2x64xf32>
    %21 = arith.addf %20, %19 : vector<2x64xf32>
    %22 = arith.divf %20, %21 : vector<2x64xf32>
    %23 = vector.extract_strided_slice %16 {offsets = [0, 64], sizes = [2, 64], strides = [1, 1]} : vector<2x256xf32> to vector<2x64xf32>
    %24 = arith.negf %23 : vector<2x64xf32>
    %25 = math.exp %24 : vector<2x64xf32>
    %cst_17 = arith.constant 1.000000e+00 : f32
    %26 = vector.broadcast %cst_17 : f32 to vector<2x64xf32>
    %27 = arith.addf %26, %25 : vector<2x64xf32>
    %28 = arith.divf %26, %27 : vector<2x64xf32>
    %29 = vector.extract_strided_slice %16 {offsets = [0, 128], sizes = [2, 64], strides = [1, 1]} : vector<2x256xf32> to vector<2x64xf32>
    %30 = math.tanh %29 : vector<2x64xf32>
    %31 = vector.extract_strided_slice %16 {offsets = [0, 192], sizes = [2, 64], strides = [1, 1]} : vector<2x256xf32> to vector<2x64xf32>
    %32 = arith.negf %31 : vector<2x64xf32>
    %33 = math.exp %32 : vector<2x64xf32>
    %cst_18 = arith.constant 1.000000e+00 : f32
    %34 = vector.broadcast %cst_18 : f32 to vector<2x64xf32>
    %35 = arith.addf %34, %33 : vector<2x64xf32>
    %36 = arith.divf %34, %35 : vector<2x64xf32>
    %37 = arith.mulf %28, %10 : vector<2x64xf32>
    %38 = arith.mulf %22, %30 : vector<2x64xf32>
    %39 = arith.addf %37, %38 : vector<2x64xf32>
    %40 = math.tanh %39 : vector<2x64xf32>
    %41 = arith.mulf %36, %40 : vector<2x64xf32>
    %cst_19 = arith.constant dense<0.000000e+00> : vector<2x256xf32>
    %42 = tpu.matmul %41, %1, %cst_19 {dimension_numbers = #tpu.dot_dimension_numbers<[1], [0], [0], [1], [0, 0, 1, 1], [], []>} : vector<2x64xf32>, vector<64x256xf32>, vector<2x256xf32> -> vector<2x256xf32>
    %43 = arith.addf %13, %42 : vector<2x256xf32>
    %44 = vector.extract_strided_slice %43 {offsets = [0, 0], sizes = [2, 64], strides = [1, 1]} : vector<2x256xf32> to vector<2x64xf32>
    %45 = arith.negf %44 : vector<2x64xf32>
    %46 = math.exp %45 : vector<2x64xf32>
    %cst_20 = arith.constant 1.000000e+00 : f32
    %47 = vector.broadcast %cst_20 : f32 to vector<2x64xf32>
    %48 = arith.addf %47, %46 : vector<2x64xf32>
    %49 = arith.divf %47, %48 : vector<2x64xf32>
    %50 = vector.extract_strided_slice %43 {offsets = [0, 64], sizes = [2, 64], strides = [1, 1]} : vector<2x256xf32> to vector<2x64xf32>
    %51 = arith.negf %50 : vector<2x64xf32>
    %52 = math.exp %51 : vector<2x64xf32>
    %cst_21 = arith.constant 1.000000e+00 : f32
    %53 = vector.broadcast %cst_21 : f32 to vector<2x64xf32>
    %54 = arith.addf %53, %52 : vector<2x64xf32>
    %55 = arith.divf %53, %54 : vector<2x64xf32>
    %56 = vector.extract_strided_slice %43 {offsets = [0, 128], sizes = [2, 64], strides = [1, 1]} : vector<2x256xf32> to vector<2x64xf32>
    %57 = math.tanh %56 : vector<2x64xf32>
    %58 = vector.extract_strided_slice %43 {offsets = [0, 192], sizes = [2, 64], strides = [1, 1]} : vector<2x256xf32> to vector<2x64xf32>
    %59 = arith.negf %58 : vector<2x64xf32>
    %60 = math.exp %59 : vector<2x64xf32>
    %cst_22 = arith.constant 1.000000e+00 : f32
    %61 = vector.broadcast %cst_22 : f32 to vector<2x64xf32>
    %62 = arith.addf %61, %60 : vector<2x64xf32>
    %63 = arith.divf %61, %62 : vector<2x64xf32>
    %64 = arith.mulf %55, %10 : vector<2x64xf32>
    %65 = arith.mulf %49, %57 : vector<2x64xf32>
    %66 = arith.addf %64, %65 : vector<2x64xf32>
    %67 = math.tanh %66 : vector<2x64xf32>
    %68 = arith.mulf %63, %67 : vector<2x64xf32>
    %cst_23 = arith.constant dense<0.000000e+00> : vector<2x256xf32>
    %69 = tpu.matmul %68, %2, %cst_23 {dimension_numbers = #tpu.dot_dimension_numbers<[1], [0], [0], [1], [0, 0, 1, 1], [], []>} : vector<2x64xf32>, vector<64x256xf32>, vector<2x256xf32> -> vector<2x256xf32>
    %70 = vector.broadcast %3 : vector<1x256xf32> to vector<2x256xf32>
    %71 = arith.addf %69, %70 : vector<2x256xf32>
    %72 = vector.extract_strided_slice %9 {offsets = [2, 0], sizes = [2, 256], strides = [1, 1]} : vector<16x256xf32> to vector<2x256xf32>
    %cst_24 = arith.constant dense<0.000000e+00> : vector<2x256xf32>
    %73 = tpu.matmul %41, %0, %cst_24 {dimension_numbers = #tpu.dot_dimension_numbers<[1], [0], [0], [1], [0, 0, 1, 1], [], []>} : vector<2x64xf32>, vector<64x256xf32>, vector<2x256xf32> -> vector<2x256xf32>
    %74 = arith.addf %72, %73 : vector<2x256xf32>
    %75 = vector.extract_strided_slice %74 {offsets = [0, 0], sizes = [2, 64], strides = [1, 1]} : vector<2x256xf32> to vector<2x64xf32>
    %76 = arith.negf %75 : vector<2x64xf32>
    %77 = math.exp %76 : vector<2x64xf32>
    %cst_25 = arith.constant 1.000000e+00 : f32
    %78 = vector.broadcast %cst_25 : f32 to vector<2x64xf32>
    %79 = arith.addf %78, %77 : vector<2x64xf32>
    %80 = arith.divf %78, %79 : vector<2x64xf32>
    %81 = vector.extract_strided_slice %74 {offsets = [0, 64], sizes = [2, 64], strides = [1, 1]} : vector<2x256xf32> to vector<2x64xf32>
    %82 = arith.negf %81 : vector<2x64xf32>
    %83 = math.exp %82 : vector<2x64xf32>
    %cst_26 = arith.constant 1.000000e+00 : f32
    %84 = vector.broadcast %cst_26 : f32 to vector<2x64xf32>
    %85 = arith.addf %84, %83 : vector<2x64xf32>
    %86 = arith.divf %84, %85 : vector<2x64xf32>
    %87 = vector.extract_strided_slice %74 {offsets = [0, 128], sizes = [2, 64], strides = [1, 1]} : vector<2x256xf32> to vector<2x64xf32>
    %88 = math.tanh %87 : vector<2x64xf32>
    %89 = vector.extract_strided_slice %74 {offsets = [0, 192], sizes = [2, 64], strides = [1, 1]} : vector<2x256xf32> to vector<2x64xf32>
    %90 = arith.negf %89 : vector<2x64xf32>
    %91 = math.exp %90 : vector<2x64xf32>
    %cst_27 = arith.constant 1.000000e+00 : f32
    %92 = vector.broadcast %cst_27 : f32 to vector<2x64xf32>
    %93 = arith.addf %92, %91 : vector<2x64xf32>
    %94 = arith.divf %92, %93 : vector<2x64xf32>
    %95 = arith.mulf %86, %39 : vector<2x64xf32>
    %96 = arith.mulf %80, %88 : vector<2x64xf32>
    %97 = arith.addf %95, %96 : vector<2x64xf32>
    %98 = math.tanh %97 : vector<2x64xf32>
    %99 = arith.mulf %94, %98 : vector<2x64xf32>
    %cst_28 = arith.constant dense<0.000000e+00> : vector<2x256xf32>
    %100 = tpu.matmul %99, %1, %cst_28 {dimension_numbers = #tpu.dot_dimension_numbers<[1], [0], [0], [1], [0, 0, 1, 1], [], []>} : vector<2x64xf32>, vector<64x256xf32>, vector<2x256xf32> -> vector<2x256xf32>
    %101 = arith.addf %71, %100 : vector<2x256xf32>
    %102 = vector.extract_strided_slice %101 {offsets = [0, 0], sizes = [2, 64], strides = [1, 1]} : vector<2x256xf32> to vector<2x64xf32>
    %103 = arith.negf %102 : vector<2x64xf32>
    %104 = math.exp %103 : vector<2x64xf32>
    %cst_29 = arith.constant 1.000000e+00 : f32
    %105 = vector.broadcast %cst_29 : f32 to vector<2x64xf32>
    %106 = arith.addf %105, %104 : vector<2x64xf32>
    %107 = arith.divf %105, %106 : vector<2x64xf32>
    %108 = vector.extract_strided_slice %101 {offsets = [0, 64], sizes = [2, 64], strides = [1, 1]} : vector<2x256xf32> to vector<2x64xf32>
    %109 = arith.negf %108 : vector<2x64xf32>
    %110 = math.exp %109 : vector<2x64xf32>
    %cst_30 = arith.constant 1.000000e+00 : f32
    %111 = vector.broadcast %cst_30 : f32 to vector<2x64xf32>
    %112 = arith.addf %111, %110 : vector<2x64xf32>
    %113 = arith.divf %111, %112 : vector<2x64xf32>
    %114 = vector.extract_strided_slice %101 {offsets = [0, 128], sizes = [2, 64], strides = [1, 1]} : vector<2x256xf32> to vector<2x64xf32>
    %115 = math.tanh %114 : vector<2x64xf32>
    %116 = vector.extract_strided_slice %101 {offsets = [0, 192], sizes = [2, 64], strides = [1, 1]} : vector<2x256xf32> to vector<2x64xf32>
    %117 = arith.negf %116 : vector<2x64xf32>
    %118 = math.exp %117 : vector<2x64xf32>
    %cst_31 = arith.constant 1.000000e+00 : f32
    %119 = vector.broadcast %cst_31 : f32 to vector<2x64xf32>
    %120 = arith.addf %119, %118 : vector<2x64xf32>
    %121 = arith.divf %119, %120 : vector<2x64xf32>
    %122 = arith.mulf %113, %66 : vector<2x64xf32>
    %123 = arith.mulf %107, %115 : vector<2x64xf32>
    %124 = arith.addf %122, %123 : vector<2x64xf32>
    %125 = math.tanh %124 : vector<2x64xf32>
    %126 = arith.mulf %121, %125 : vector<2x64xf32>
    %cst_32 = arith.constant dense<0.000000e+00> : vector<2x256xf32>
    %127 = tpu.matmul %126, %2, %cst_32 {dimension_numbers = #tpu.dot_dimension_numbers<[1], [0], [0], [1], [0, 0, 1, 1], [], []>} : vector<2x64xf32>, vector<64x256xf32>, vector<2x256xf32> -> vector<2x256xf32>
    %128 = vector.broadcast %3 : vector<1x256xf32> to vector<2x256xf32>
    %129 = arith.addf %127, %128 : vector<2x256xf32>
    %130 = vector.extract_strided_slice %9 {offsets = [4, 0], sizes = [2, 256], strides = [1, 1]} : vector<16x256xf32> to vector<2x256xf32>
    %cst_33 = arith.constant dense<0.000000e+00> : vector<2x256xf32>
    %131 = tpu.matmul %99, %0, %cst_33 {dimension_numbers = #tpu.dot_dimension_numbers<[1], [0], [0], [1], [0, 0, 1, 1], [], []>} : vector<2x64xf32>, vector<64x256xf32>, vector<2x256xf32> -> vector<2x256xf32>
    %132 = arith.addf %130, %131 : vector<2x256xf32>
    %133 = vector.extract_strided_slice %132 {offsets = [0, 0], sizes = [2, 64], strides = [1, 1]} : vector<2x256xf32> to vector<2x64xf32>
    %134 = arith.negf %133 : vector<2x64xf32>
    %135 = math.exp %134 : vector<2x64xf32>
    %cst_34 = arith.constant 1.000000e+00 : f32
    %136 = vector.broadcast %cst_34 : f32 to vector<2x64xf32>
    %137 = arith.addf %136, %135 : vector<2x64xf32>
    %138 = arith.divf %136, %137 : vector<2x64xf32>
    %139 = vector.extract_strided_slice %132 {offsets = [0, 64], sizes = [2, 64], strides = [1, 1]} : vector<2x256xf32> to vector<2x64xf32>
    %140 = arith.negf %139 : vector<2x64xf32>
    %141 = math.exp %140 : vector<2x64xf32>
    %cst_35 = arith.constant 1.000000e+00 : f32
    %142 = vector.broadcast %cst_35 : f32 to vector<2x64xf32>
    %143 = arith.addf %142, %141 : vector<2x64xf32>
    %144 = arith.divf %142, %143 : vector<2x64xf32>
    %145 = vector.extract_strided_slice %132 {offsets = [0, 128], sizes = [2, 64], strides = [1, 1]} : vector<2x256xf32> to vector<2x64xf32>
    %146 = math.tanh %145 : vector<2x64xf32>
    %147 = vector.extract_strided_slice %132 {offsets = [0, 192], sizes = [2, 64], strides = [1, 1]} : vector<2x256xf32> to vector<2x64xf32>
    %148 = arith.negf %147 : vector<2x64xf32>
    %149 = math.exp %148 : vector<2x64xf32>
    %cst_36 = arith.constant 1.000000e+00 : f32
    %150 = vector.broadcast %cst_36 : f32 to vector<2x64xf32>
    %151 = arith.addf %150, %149 : vector<2x64xf32>
    %152 = arith.divf %150, %151 : vector<2x64xf32>
    %153 = arith.mulf %144, %97 : vector<2x64xf32>
    %154 = arith.mulf %138, %146 : vector<2x64xf32>
    %155 = arith.addf %153, %154 : vector<2x64xf32>
    %156 = math.tanh %155 : vector<2x64xf32>
    %157 = arith.mulf %152, %156 : vector<2x64xf32>
    %cst_37 = arith.constant dense<0.000000e+00> : vector<2x256xf32>
    %158 = tpu.matmul %157, %1, %cst_37 {dimension_numbers = #tpu.dot_dimension_numbers<[1], [0], [0], [1], [0, 0, 1, 1], [], []>} : vector<2x64xf32>, vector<64x256xf32>, vector<2x256xf32> -> vector<2x256xf32>
    %159 = arith.addf %129, %158 : vector<2x256xf32>
    %160 = vector.extract_strided_slice %159 {offsets = [0, 0], sizes = [2, 64], strides = [1, 1]} : vector<2x256xf32> to vector<2x64xf32>
    %161 = arith.negf %160 : vector<2x64xf32>
    %162 = math.exp %161 : vector<2x64xf32>
    %cst_38 = arith.constant 1.000000e+00 : f32
    %163 = vector.broadcast %cst_38 : f32 to vector<2x64xf32>
    %164 = arith.addf %163, %162 : vector<2x64xf32>
    %165 = arith.divf %163, %164 : vector<2x64xf32>
    %166 = vector.extract_strided_slice %159 {offsets = [0, 64], sizes = [2, 64], strides = [1, 1]} : vector<2x256xf32> to vector<2x64xf32>
    %167 = arith.negf %166 : vector<2x64xf32>
    %168 = math.exp %167 : vector<2x64xf32>
    %cst_39 = arith.constant 1.000000e+00 : f32
    %169 = vector.broadcast %cst_39 : f32 to vector<2x64xf32>
    %170 = arith.addf %169, %168 : vector<2x64xf32>
    %171 = arith.divf %169, %170 : vector<2x64xf32>
    %172 = vector.extract_strided_slice %159 {offsets = [0, 128], sizes = [2, 64], strides = [1, 1]} : vector<2x256xf32> to vector<2x64xf32>
    %173 = math.tanh %172 : vector<2x64xf32>
    %174 = vector.extract_strided_slice %159 {offsets = [0, 192], sizes = [2, 64], strides = [1, 1]} : vector<2x256xf32> to vector<2x64xf32>
    %175 = arith.negf %174 : vector<2x64xf32>
    %176 = math.exp %175 : vector<2x64xf32>
    %cst_40 = arith.constant 1.000000e+00 : f32
    %177 = vector.broadcast %cst_40 : f32 to vector<2x64xf32>
    %178 = arith.addf %177, %176 : vector<2x64xf32>
    %179 = arith.divf %177, %178 : vector<2x64xf32>
    %180 = arith.mulf %171, %124 : vector<2x64xf32>
    %181 = arith.mulf %165, %173 : vector<2x64xf32>
    %182 = arith.addf %180, %181 : vector<2x64xf32>
    %183 = math.tanh %182 : vector<2x64xf32>
    %184 = arith.mulf %179, %183 : vector<2x64xf32>
    %cst_41 = arith.constant dense<0.000000e+00> : vector<2x256xf32>
    %185 = tpu.matmul %184, %2, %cst_41 {dimension_numbers = #tpu.dot_dimension_numbers<[1], [0], [0], [1], [0, 0, 1, 1], [], []>} : vector<2x64xf32>, vector<64x256xf32>, vector<2x256xf32> -> vector<2x256xf32>
    %186 = vector.broadcast %3 : vector<1x256xf32> to vector<2x256xf32>
    %187 = arith.addf %185, %186 : vector<2x256xf32>
    %188 = vector.extract_strided_slice %9 {offsets = [6, 0], sizes = [2, 256], strides = [1, 1]} : vector<16x256xf32> to vector<2x256xf32>
    %cst_42 = arith.constant dense<0.000000e+00> : vector<2x256xf32>
    %189 = tpu.matmul %157, %0, %cst_42 {dimension_numbers = #tpu.dot_dimension_numbers<[1], [0], [0], [1], [0, 0, 1, 1], [], []>} : vector<2x64xf32>, vector<64x256xf32>, vector<2x256xf32> -> vector<2x256xf32>
    %190 = arith.addf %188, %189 : vector<2x256xf32>
    %191 = vector.extract_strided_slice %190 {offsets = [0, 0], sizes = [2, 64], strides = [1, 1]} : vector<2x256xf32> to vector<2x64xf32>
    %192 = arith.negf %191 : vector<2x64xf32>
    %193 = math.exp %192 : vector<2x64xf32>
    %cst_43 = arith.constant 1.000000e+00 : f32
    %194 = vector.broadcast %cst_43 : f32 to vector<2x64xf32>
    %195 = arith.addf %194, %193 : vector<2x64xf32>
    %196 = arith.divf %194, %195 : vector<2x64xf32>
    %197 = vector.extract_strided_slice %190 {offsets = [0, 64], sizes = [2, 64], strides = [1, 1]} : vector<2x256xf32> to vector<2x64xf32>
    %198 = arith.negf %197 : vector<2x64xf32>
    %199 = math.exp %198 : vector<2x64xf32>
    %cst_44 = arith.constant 1.000000e+00 : f32
    %200 = vector.broadcast %cst_44 : f32 to vector<2x64xf32>
    %201 = arith.addf %200, %199 : vector<2x64xf32>
    %202 = arith.divf %200, %201 : vector<2x64xf32>
    %203 = vector.extract_strided_slice %190 {offsets = [0, 128], sizes = [2, 64], strides = [1, 1]} : vector<2x256xf32> to vector<2x64xf32>
    %204 = math.tanh %203 : vector<2x64xf32>
    %205 = vector.extract_strided_slice %190 {offsets = [0, 192], sizes = [2, 64], strides = [1, 1]} : vector<2x256xf32> to vector<2x64xf32>
    %206 = arith.negf %205 : vector<2x64xf32>
    %207 = math.exp %206 : vector<2x64xf32>
    %cst_45 = arith.constant 1.000000e+00 : f32
    %208 = vector.broadcast %cst_45 : f32 to vector<2x64xf32>
    %209 = arith.addf %208, %207 : vector<2x64xf32>
    %210 = arith.divf %208, %209 : vector<2x64xf32>
    %211 = arith.mulf %202, %155 : vector<2x64xf32>
    %212 = arith.mulf %196, %204 : vector<2x64xf32>
    %213 = arith.addf %211, %212 : vector<2x64xf32>
    %214 = math.tanh %213 : vector<2x64xf32>
    %215 = arith.mulf %210, %214 : vector<2x64xf32>
    %cst_46 = arith.constant dense<0.000000e+00> : vector<2x256xf32>
    %216 = tpu.matmul %215, %1, %cst_46 {dimension_numbers = #tpu.dot_dimension_numbers<[1], [0], [0], [1], [0, 0, 1, 1], [], []>} : vector<2x64xf32>, vector<64x256xf32>, vector<2x256xf32> -> vector<2x256xf32>
    %217 = arith.addf %187, %216 : vector<2x256xf32>
    %218 = vector.extract_strided_slice %217 {offsets = [0, 0], sizes = [2, 64], strides = [1, 1]} : vector<2x256xf32> to vector<2x64xf32>
    %219 = arith.negf %218 : vector<2x64xf32>
    %220 = math.exp %219 : vector<2x64xf32>
    %cst_47 = arith.constant 1.000000e+00 : f32
    %221 = vector.broadcast %cst_47 : f32 to vector<2x64xf32>
    %222 = arith.addf %221, %220 : vector<2x64xf32>
    %223 = arith.divf %221, %222 : vector<2x64xf32>
    %224 = vector.extract_strided_slice %217 {offsets = [0, 64], sizes = [2, 64], strides = [1, 1]} : vector<2x256xf32> to vector<2x64xf32>
    %225 = arith.negf %224 : vector<2x64xf32>
    %226 = math.exp %225 : vector<2x64xf32>
    %cst_48 = arith.constant 1.000000e+00 : f32
    %227 = vector.broadcast %cst_48 : f32 to vector<2x64xf32>
    %228 = arith.addf %227, %226 : vector<2x64xf32>
    %229 = arith.divf %227, %228 : vector<2x64xf32>
    %230 = vector.extract_strided_slice %217 {offsets = [0, 128], sizes = [2, 64], strides = [1, 1]} : vector<2x256xf32> to vector<2x64xf32>
    %231 = math.tanh %230 : vector<2x64xf32>
    %232 = vector.extract_strided_slice %217 {offsets = [0, 192], sizes = [2, 64], strides = [1, 1]} : vector<2x256xf32> to vector<2x64xf32>
    %233 = arith.negf %232 : vector<2x64xf32>
    %234 = math.exp %233 : vector<2x64xf32>
    %cst_49 = arith.constant 1.000000e+00 : f32
    %235 = vector.broadcast %cst_49 : f32 to vector<2x64xf32>
    %236 = arith.addf %235, %234 : vector<2x64xf32>
    %237 = arith.divf %235, %236 : vector<2x64xf32>
    %238 = arith.mulf %229, %182 : vector<2x64xf32>
    %239 = arith.mulf %223, %231 : vector<2x64xf32>
    %240 = arith.addf %238, %239 : vector<2x64xf32>
    %241 = math.tanh %240 : vector<2x64xf32>
    %242 = arith.mulf %237, %241 : vector<2x64xf32>
    %cst_50 = arith.constant dense<0.000000e+00> : vector<2x256xf32>
    %243 = tpu.matmul %242, %2, %cst_50 {dimension_numbers = #tpu.dot_dimension_numbers<[1], [0], [0], [1], [0, 0, 1, 1], [], []>} : vector<2x64xf32>, vector<64x256xf32>, vector<2x256xf32> -> vector<2x256xf32>
    %244 = vector.broadcast %3 : vector<1x256xf32> to vector<2x256xf32>
    %245 = arith.addf %243, %244 : vector<2x256xf32>
    %246 = vector.extract_strided_slice %9 {offsets = [8, 0], sizes = [2, 256], strides = [1, 1]} : vector<16x256xf32> to vector<2x256xf32>
    %cst_51 = arith.constant dense<0.000000e+00> : vector<2x256xf32>
    %247 = tpu.matmul %215, %0, %cst_51 {dimension_numbers = #tpu.dot_dimension_numbers<[1], [0], [0], [1], [0, 0, 1, 1], [], []>} : vector<2x64xf32>, vector<64x256xf32>, vector<2x256xf32> -> vector<2x256xf32>
    %248 = arith.addf %246, %247 : vector<2x256xf32>
    %249 = vector.extract_strided_slice %248 {offsets = [0, 0], sizes = [2, 64], strides = [1, 1]} : vector<2x256xf32> to vector<2x64xf32>
    %250 = arith.negf %249 : vector<2x64xf32>
    %251 = math.exp %250 : vector<2x64xf32>
    %cst_52 = arith.constant 1.000000e+00 : f32
    %252 = vector.broadcast %cst_52 : f32 to vector<2x64xf32>
    %253 = arith.addf %252, %251 : vector<2x64xf32>
    %254 = arith.divf %252, %253 : vector<2x64xf32>
    %255 = vector.extract_strided_slice %248 {offsets = [0, 64], sizes = [2, 64], strides = [1, 1]} : vector<2x256xf32> to vector<2x64xf32>
    %256 = arith.negf %255 : vector<2x64xf32>
    %257 = math.exp %256 : vector<2x64xf32>
    %cst_53 = arith.constant 1.000000e+00 : f32
    %258 = vector.broadcast %cst_53 : f32 to vector<2x64xf32>
    %259 = arith.addf %258, %257 : vector<2x64xf32>
    %260 = arith.divf %258, %259 : vector<2x64xf32>
    %261 = vector.extract_strided_slice %248 {offsets = [0, 128], sizes = [2, 64], strides = [1, 1]} : vector<2x256xf32> to vector<2x64xf32>
    %262 = math.tanh %261 : vector<2x64xf32>
    %263 = vector.extract_strided_slice %248 {offsets = [0, 192], sizes = [2, 64], strides = [1, 1]} : vector<2x256xf32> to vector<2x64xf32>
    %264 = arith.negf %263 : vector<2x64xf32>
    %265 = math.exp %264 : vector<2x64xf32>
    %cst_54 = arith.constant 1.000000e+00 : f32
    %266 = vector.broadcast %cst_54 : f32 to vector<2x64xf32>
    %267 = arith.addf %266, %265 : vector<2x64xf32>
    %268 = arith.divf %266, %267 : vector<2x64xf32>
    %269 = arith.mulf %260, %213 : vector<2x64xf32>
    %270 = arith.mulf %254, %262 : vector<2x64xf32>
    %271 = arith.addf %269, %270 : vector<2x64xf32>
    %272 = math.tanh %271 : vector<2x64xf32>
    %273 = arith.mulf %268, %272 : vector<2x64xf32>
    %cst_55 = arith.constant dense<0.000000e+00> : vector<2x256xf32>
    %274 = tpu.matmul %273, %1, %cst_55 {dimension_numbers = #tpu.dot_dimension_numbers<[1], [0], [0], [1], [0, 0, 1, 1], [], []>} : vector<2x64xf32>, vector<64x256xf32>, vector<2x256xf32> -> vector<2x256xf32>
    %275 = arith.addf %245, %274 : vector<2x256xf32>
    %276 = vector.extract_strided_slice %275 {offsets = [0, 0], sizes = [2, 64], strides = [1, 1]} : vector<2x256xf32> to vector<2x64xf32>
    %277 = arith.negf %276 : vector<2x64xf32>
    %278 = math.exp %277 : vector<2x64xf32>
    %cst_56 = arith.constant 1.000000e+00 : f32
    %279 = vector.broadcast %cst_56 : f32 to vector<2x64xf32>
    %280 = arith.addf %279, %278 : vector<2x64xf32>
    %281 = arith.divf %279, %280 : vector<2x64xf32>
    %282 = vector.extract_strided_slice %275 {offsets = [0, 64], sizes = [2, 64], strides = [1, 1]} : vector<2x256xf32> to vector<2x64xf32>
    %283 = arith.negf %282 : vector<2x64xf32>
    %284 = math.exp %283 : vector<2x64xf32>
    %cst_57 = arith.constant 1.000000e+00 : f32
    %285 = vector.broadcast %cst_57 : f32 to vector<2x64xf32>
    %286 = arith.addf %285, %284 : vector<2x64xf32>
    %287 = arith.divf %285, %286 : vector<2x64xf32>
    %288 = vector.extract_strided_slice %275 {offsets = [0, 128], sizes = [2, 64], strides = [1, 1]} : vector<2x256xf32> to vector<2x64xf32>
    %289 = math.tanh %288 : vector<2x64xf32>
    %290 = vector.extract_strided_slice %275 {offsets = [0, 192], sizes = [2, 64], strides = [1, 1]} : vector<2x256xf32> to vector<2x64xf32>
    %291 = arith.negf %290 : vector<2x64xf32>
    %292 = math.exp %291 : vector<2x64xf32>
    %cst_58 = arith.constant 1.000000e+00 : f32
    %293 = vector.broadcast %cst_58 : f32 to vector<2x64xf32>
    %294 = arith.addf %293, %292 : vector<2x64xf32>
    %295 = arith.divf %293, %294 : vector<2x64xf32>
    %296 = arith.mulf %287, %240 : vector<2x64xf32>
    %297 = arith.mulf %281, %289 : vector<2x64xf32>
    %298 = arith.addf %296, %297 : vector<2x64xf32>
    %299 = math.tanh %298 : vector<2x64xf32>
    %300 = arith.mulf %295, %299 : vector<2x64xf32>
    %cst_59 = arith.constant dense<0.000000e+00> : vector<2x256xf32>
    %301 = tpu.matmul %300, %2, %cst_59 {dimension_numbers = #tpu.dot_dimension_numbers<[1], [0], [0], [1], [0, 0, 1, 1], [], []>} : vector<2x64xf32>, vector<64x256xf32>, vector<2x256xf32> -> vector<2x256xf32>
    %302 = vector.broadcast %3 : vector<1x256xf32> to vector<2x256xf32>
    %303 = arith.addf %301, %302 : vector<2x256xf32>
    %304 = vector.extract_strided_slice %9 {offsets = [10, 0], sizes = [2, 256], strides = [1, 1]} : vector<16x256xf32> to vector<2x256xf32>
    %cst_60 = arith.constant dense<0.000000e+00> : vector<2x256xf32>
    %305 = tpu.matmul %273, %0, %cst_60 {dimension_numbers = #tpu.dot_dimension_numbers<[1], [0], [0], [1], [0, 0, 1, 1], [], []>} : vector<2x64xf32>, vector<64x256xf32>, vector<2x256xf32> -> vector<2x256xf32>
    %306 = arith.addf %304, %305 : vector<2x256xf32>
    %307 = vector.extract_strided_slice %306 {offsets = [0, 0], sizes = [2, 64], strides = [1, 1]} : vector<2x256xf32> to vector<2x64xf32>
    %308 = arith.negf %307 : vector<2x64xf32>
    %309 = math.exp %308 : vector<2x64xf32>
    %cst_61 = arith.constant 1.000000e+00 : f32
    %310 = vector.broadcast %cst_61 : f32 to vector<2x64xf32>
    %311 = arith.addf %310, %309 : vector<2x64xf32>
    %312 = arith.divf %310, %311 : vector<2x64xf32>
    %313 = vector.extract_strided_slice %306 {offsets = [0, 64], sizes = [2, 64], strides = [1, 1]} : vector<2x256xf32> to vector<2x64xf32>
    %314 = arith.negf %313 : vector<2x64xf32>
    %315 = math.exp %314 : vector<2x64xf32>
    %cst_62 = arith.constant 1.000000e+00 : f32
    %316 = vector.broadcast %cst_62 : f32 to vector<2x64xf32>
    %317 = arith.addf %316, %315 : vector<2x64xf32>
    %318 = arith.divf %316, %317 : vector<2x64xf32>
    %319 = vector.extract_strided_slice %306 {offsets = [0, 128], sizes = [2, 64], strides = [1, 1]} : vector<2x256xf32> to vector<2x64xf32>
    %320 = math.tanh %319 : vector<2x64xf32>
    %321 = vector.extract_strided_slice %306 {offsets = [0, 192], sizes = [2, 64], strides = [1, 1]} : vector<2x256xf32> to vector<2x64xf32>
    %322 = arith.negf %321 : vector<2x64xf32>
    %323 = math.exp %322 : vector<2x64xf32>
    %cst_63 = arith.constant 1.000000e+00 : f32
    %324 = vector.broadcast %cst_63 : f32 to vector<2x64xf32>
    %325 = arith.addf %324, %323 : vector<2x64xf32>
    %326 = arith.divf %324, %325 : vector<2x64xf32>
    %327 = arith.mulf %318, %271 : vector<2x64xf32>
    %328 = arith.mulf %312, %320 : vector<2x64xf32>
    %329 = arith.addf %327, %328 : vector<2x64xf32>
    %330 = math.tanh %329 : vector<2x64xf32>
    %331 = arith.mulf %326, %330 : vector<2x64xf32>
    %cst_64 = arith.constant dense<0.000000e+00> : vector<2x256xf32>
    %332 = tpu.matmul %331, %1, %cst_64 {dimension_numbers = #tpu.dot_dimension_numbers<[1], [0], [0], [1], [0, 0, 1, 1], [], []>} : vector<2x64xf32>, vector<64x256xf32>, vector<2x256xf32> -> vector<2x256xf32>
    %333 = arith.addf %303, %332 : vector<2x256xf32>
    %334 = vector.extract_strided_slice %333 {offsets = [0, 0], sizes = [2, 64], strides = [1, 1]} : vector<2x256xf32> to vector<2x64xf32>
    %335 = arith.negf %334 : vector<2x64xf32>
    %336 = math.exp %335 : vector<2x64xf32>
    %cst_65 = arith.constant 1.000000e+00 : f32
    %337 = vector.broadcast %cst_65 : f32 to vector<2x64xf32>
    %338 = arith.addf %337, %336 : vector<2x64xf32>
    %339 = arith.divf %337, %338 : vector<2x64xf32>
    %340 = vector.extract_strided_slice %333 {offsets = [0, 64], sizes = [2, 64], strides = [1, 1]} : vector<2x256xf32> to vector<2x64xf32>
    %341 = arith.negf %340 : vector<2x64xf32>
    %342 = math.exp %341 : vector<2x64xf32>
    %cst_66 = arith.constant 1.000000e+00 : f32
    %343 = vector.broadcast %cst_66 : f32 to vector<2x64xf32>
    %344 = arith.addf %343, %342 : vector<2x64xf32>
    %345 = arith.divf %343, %344 : vector<2x64xf32>
    %346 = vector.extract_strided_slice %333 {offsets = [0, 128], sizes = [2, 64], strides = [1, 1]} : vector<2x256xf32> to vector<2x64xf32>
    %347 = math.tanh %346 : vector<2x64xf32>
    %348 = vector.extract_strided_slice %333 {offsets = [0, 192], sizes = [2, 64], strides = [1, 1]} : vector<2x256xf32> to vector<2x64xf32>
    %349 = arith.negf %348 : vector<2x64xf32>
    %350 = math.exp %349 : vector<2x64xf32>
    %cst_67 = arith.constant 1.000000e+00 : f32
    %351 = vector.broadcast %cst_67 : f32 to vector<2x64xf32>
    %352 = arith.addf %351, %350 : vector<2x64xf32>
    %353 = arith.divf %351, %352 : vector<2x64xf32>
    %354 = arith.mulf %345, %298 : vector<2x64xf32>
    %355 = arith.mulf %339, %347 : vector<2x64xf32>
    %356 = arith.addf %354, %355 : vector<2x64xf32>
    %357 = math.tanh %356 : vector<2x64xf32>
    %358 = arith.mulf %353, %357 : vector<2x64xf32>
    %cst_68 = arith.constant dense<0.000000e+00> : vector<2x256xf32>
    %359 = tpu.matmul %358, %2, %cst_68 {dimension_numbers = #tpu.dot_dimension_numbers<[1], [0], [0], [1], [0, 0, 1, 1], [], []>} : vector<2x64xf32>, vector<64x256xf32>, vector<2x256xf32> -> vector<2x256xf32>
    %360 = vector.broadcast %3 : vector<1x256xf32> to vector<2x256xf32>
    %361 = arith.addf %359, %360 : vector<2x256xf32>
    %362 = vector.extract_strided_slice %9 {offsets = [12, 0], sizes = [2, 256], strides = [1, 1]} : vector<16x256xf32> to vector<2x256xf32>
    %cst_69 = arith.constant dense<0.000000e+00> : vector<2x256xf32>
    %363 = tpu.matmul %331, %0, %cst_69 {dimension_numbers = #tpu.dot_dimension_numbers<[1], [0], [0], [1], [0, 0, 1, 1], [], []>} : vector<2x64xf32>, vector<64x256xf32>, vector<2x256xf32> -> vector<2x256xf32>
    %364 = arith.addf %362, %363 : vector<2x256xf32>
    %365 = vector.extract_strided_slice %364 {offsets = [0, 0], sizes = [2, 64], strides = [1, 1]} : vector<2x256xf32> to vector<2x64xf32>
    %366 = arith.negf %365 : vector<2x64xf32>
    %367 = math.exp %366 : vector<2x64xf32>
    %cst_70 = arith.constant 1.000000e+00 : f32
    %368 = vector.broadcast %cst_70 : f32 to vector<2x64xf32>
    %369 = arith.addf %368, %367 : vector<2x64xf32>
    %370 = arith.divf %368, %369 : vector<2x64xf32>
    %371 = vector.extract_strided_slice %364 {offsets = [0, 64], sizes = [2, 64], strides = [1, 1]} : vector<2x256xf32> to vector<2x64xf32>
    %372 = arith.negf %371 : vector<2x64xf32>
    %373 = math.exp %372 : vector<2x64xf32>
    %cst_71 = arith.constant 1.000000e+00 : f32
    %374 = vector.broadcast %cst_71 : f32 to vector<2x64xf32>
    %375 = arith.addf %374, %373 : vector<2x64xf32>
    %376 = arith.divf %374, %375 : vector<2x64xf32>
    %377 = vector.extract_strided_slice %364 {offsets = [0, 128], sizes = [2, 64], strides = [1, 1]} : vector<2x256xf32> to vector<2x64xf32>
    %378 = math.tanh %377 : vector<2x64xf32>
    %379 = vector.extract_strided_slice %364 {offsets = [0, 192], sizes = [2, 64], strides = [1, 1]} : vector<2x256xf32> to vector<2x64xf32>
    %380 = arith.negf %379 : vector<2x64xf32>
    %381 = math.exp %380 : vector<2x64xf32>
    %cst_72 = arith.constant 1.000000e+00 : f32
    %382 = vector.broadcast %cst_72 : f32 to vector<2x64xf32>
    %383 = arith.addf %382, %381 : vector<2x64xf32>
    %384 = arith.divf %382, %383 : vector<2x64xf32>
    %385 = arith.mulf %376, %329 : vector<2x64xf32>
    %386 = arith.mulf %370, %378 : vector<2x64xf32>
    %387 = arith.addf %385, %386 : vector<2x64xf32>
    %388 = math.tanh %387 : vector<2x64xf32>
    %389 = arith.mulf %384, %388 : vector<2x64xf32>
    %cst_73 = arith.constant dense<0.000000e+00> : vector<2x256xf32>
    %390 = tpu.matmul %389, %1, %cst_73 {dimension_numbers = #tpu.dot_dimension_numbers<[1], [0], [0], [1], [0, 0, 1, 1], [], []>} : vector<2x64xf32>, vector<64x256xf32>, vector<2x256xf32> -> vector<2x256xf32>
    %391 = arith.addf %361, %390 : vector<2x256xf32>
    %392 = vector.extract_strided_slice %391 {offsets = [0, 0], sizes = [2, 64], strides = [1, 1]} : vector<2x256xf32> to vector<2x64xf32>
    %393 = arith.negf %392 : vector<2x64xf32>
    %394 = math.exp %393 : vector<2x64xf32>
    %cst_74 = arith.constant 1.000000e+00 : f32
    %395 = vector.broadcast %cst_74 : f32 to vector<2x64xf32>
    %396 = arith.addf %395, %394 : vector<2x64xf32>
    %397 = arith.divf %395, %396 : vector<2x64xf32>
    %398 = vector.extract_strided_slice %391 {offsets = [0, 64], sizes = [2, 64], strides = [1, 1]} : vector<2x256xf32> to vector<2x64xf32>
    %399 = arith.negf %398 : vector<2x64xf32>
    %400 = math.exp %399 : vector<2x64xf32>
    %cst_75 = arith.constant 1.000000e+00 : f32
    %401 = vector.broadcast %cst_75 : f32 to vector<2x64xf32>
    %402 = arith.addf %401, %400 : vector<2x64xf32>
    %403 = arith.divf %401, %402 : vector<2x64xf32>
    %404 = vector.extract_strided_slice %391 {offsets = [0, 128], sizes = [2, 64], strides = [1, 1]} : vector<2x256xf32> to vector<2x64xf32>
    %405 = math.tanh %404 : vector<2x64xf32>
    %406 = vector.extract_strided_slice %391 {offsets = [0, 192], sizes = [2, 64], strides = [1, 1]} : vector<2x256xf32> to vector<2x64xf32>
    %407 = arith.negf %406 : vector<2x64xf32>
    %408 = math.exp %407 : vector<2x64xf32>
    %cst_76 = arith.constant 1.000000e+00 : f32
    %409 = vector.broadcast %cst_76 : f32 to vector<2x64xf32>
    %410 = arith.addf %409, %408 : vector<2x64xf32>
    %411 = arith.divf %409, %410 : vector<2x64xf32>
    %412 = arith.mulf %403, %356 : vector<2x64xf32>
    %413 = arith.mulf %397, %405 : vector<2x64xf32>
    %414 = arith.addf %412, %413 : vector<2x64xf32>
    %415 = math.tanh %414 : vector<2x64xf32>
    %416 = arith.mulf %411, %415 : vector<2x64xf32>
    %cst_77 = arith.constant dense<0.000000e+00> : vector<2x256xf32>
    %417 = tpu.matmul %416, %2, %cst_77 {dimension_numbers = #tpu.dot_dimension_numbers<[1], [0], [0], [1], [0, 0, 1, 1], [], []>} : vector<2x64xf32>, vector<64x256xf32>, vector<2x256xf32> -> vector<2x256xf32>
    %418 = vector.broadcast %3 : vector<1x256xf32> to vector<2x256xf32>
    %419 = arith.addf %417, %418 : vector<2x256xf32>
    %420 = vector.extract_strided_slice %9 {offsets = [14, 0], sizes = [2, 256], strides = [1, 1]} : vector<16x256xf32> to vector<2x256xf32>
    %cst_78 = arith.constant dense<0.000000e+00> : vector<2x256xf32>
    %421 = tpu.matmul %389, %0, %cst_78 {dimension_numbers = #tpu.dot_dimension_numbers<[1], [0], [0], [1], [0, 0, 1, 1], [], []>} : vector<2x64xf32>, vector<64x256xf32>, vector<2x256xf32> -> vector<2x256xf32>
    %422 = arith.addf %420, %421 : vector<2x256xf32>
    %423 = vector.extract_strided_slice %422 {offsets = [0, 0], sizes = [2, 64], strides = [1, 1]} : vector<2x256xf32> to vector<2x64xf32>
    %424 = arith.negf %423 : vector<2x64xf32>
    %425 = math.exp %424 : vector<2x64xf32>
    %cst_79 = arith.constant 1.000000e+00 : f32
    %426 = vector.broadcast %cst_79 : f32 to vector<2x64xf32>
    %427 = arith.addf %426, %425 : vector<2x64xf32>
    %428 = arith.divf %426, %427 : vector<2x64xf32>
    %429 = vector.extract_strided_slice %422 {offsets = [0, 64], sizes = [2, 64], strides = [1, 1]} : vector<2x256xf32> to vector<2x64xf32>
    %430 = arith.negf %429 : vector<2x64xf32>
    %431 = math.exp %430 : vector<2x64xf32>
    %cst_80 = arith.constant 1.000000e+00 : f32
    %432 = vector.broadcast %cst_80 : f32 to vector<2x64xf32>
    %433 = arith.addf %432, %431 : vector<2x64xf32>
    %434 = arith.divf %432, %433 : vector<2x64xf32>
    %435 = vector.extract_strided_slice %422 {offsets = [0, 128], sizes = [2, 64], strides = [1, 1]} : vector<2x256xf32> to vector<2x64xf32>
    %436 = math.tanh %435 : vector<2x64xf32>
    %437 = vector.extract_strided_slice %422 {offsets = [0, 192], sizes = [2, 64], strides = [1, 1]} : vector<2x256xf32> to vector<2x64xf32>
    %438 = arith.negf %437 : vector<2x64xf32>
    %439 = math.exp %438 : vector<2x64xf32>
    %cst_81 = arith.constant 1.000000e+00 : f32
    %440 = vector.broadcast %cst_81 : f32 to vector<2x64xf32>
    %441 = arith.addf %440, %439 : vector<2x64xf32>
    %442 = arith.divf %440, %441 : vector<2x64xf32>
    %443 = arith.mulf %434, %387 : vector<2x64xf32>
    %444 = arith.mulf %428, %436 : vector<2x64xf32>
    %445 = arith.addf %443, %444 : vector<2x64xf32>
    %446 = math.tanh %445 : vector<2x64xf32>
    %447 = arith.mulf %442, %446 : vector<2x64xf32>
    %cst_82 = arith.constant dense<0.000000e+00> : vector<2x256xf32>
    %448 = tpu.matmul %447, %1, %cst_82 {dimension_numbers = #tpu.dot_dimension_numbers<[1], [0], [0], [1], [0, 0, 1, 1], [], []>} : vector<2x64xf32>, vector<64x256xf32>, vector<2x256xf32> -> vector<2x256xf32>
    %449 = arith.addf %419, %448 : vector<2x256xf32>
    %450 = vector.extract_strided_slice %449 {offsets = [0, 0], sizes = [2, 64], strides = [1, 1]} : vector<2x256xf32> to vector<2x64xf32>
    %451 = arith.negf %450 : vector<2x64xf32>
    %452 = math.exp %451 : vector<2x64xf32>
    %cst_83 = arith.constant 1.000000e+00 : f32
    %453 = vector.broadcast %cst_83 : f32 to vector<2x64xf32>
    %454 = arith.addf %453, %452 : vector<2x64xf32>
    %455 = arith.divf %453, %454 : vector<2x64xf32>
    %456 = vector.extract_strided_slice %449 {offsets = [0, 64], sizes = [2, 64], strides = [1, 1]} : vector<2x256xf32> to vector<2x64xf32>
    %457 = arith.negf %456 : vector<2x64xf32>
    %458 = math.exp %457 : vector<2x64xf32>
    %cst_84 = arith.constant 1.000000e+00 : f32
    %459 = vector.broadcast %cst_84 : f32 to vector<2x64xf32>
    %460 = arith.addf %459, %458 : vector<2x64xf32>
    %461 = arith.divf %459, %460 : vector<2x64xf32>
    %462 = vector.extract_strided_slice %449 {offsets = [0, 128], sizes = [2, 64], strides = [1, 1]} : vector<2x256xf32> to vector<2x64xf32>
    %463 = math.tanh %462 : vector<2x64xf32>
    %464 = vector.extract_strided_slice %449 {offsets = [0, 192], sizes = [2, 64], strides = [1, 1]} : vector<2x256xf32> to vector<2x64xf32>
    %465 = arith.negf %464 : vector<2x64xf32>
    %466 = math.exp %465 : vector<2x64xf32>
    %cst_85 = arith.constant 1.000000e+00 : f32
    %467 = vector.broadcast %cst_85 : f32 to vector<2x64xf32>
    %468 = arith.addf %467, %466 : vector<2x64xf32>
    %469 = arith.divf %467, %468 : vector<2x64xf32>
    %470 = arith.mulf %461, %414 : vector<2x64xf32>
    %471 = arith.mulf %455, %463 : vector<2x64xf32>
    %472 = arith.addf %470, %471 : vector<2x64xf32>
    %473 = math.tanh %472 : vector<2x64xf32>
    %474 = arith.mulf %469, %473 : vector<2x64xf32>
    %c0_86 = arith.constant 0 : index
    %c0_87 = arith.constant 0 : index
    %475 = vector.load %arg8[%c0_86, %c0_87] : memref<64x360xf32, #tpu.memory_space<vmem>>, vector<64x360xf32>
    %cst_88 = arith.constant dense<0.000000e+00> : vector<2x360xf32>
    %476 = tpu.matmul %474, %475, %cst_88 {dimension_numbers = #tpu.dot_dimension_numbers<[1], [0], [0], [1], [0, 0, 1, 1], [], []>} : vector<2x64xf32>, vector<64x360xf32>, vector<2x360xf32> -> vector<2x360xf32>
    %c0_89 = arith.constant 0 : index
    %c0_90 = arith.constant 0 : index
    %477 = vector.load %arg9[%c0_89, %c0_90] : memref<1x360xf32, #tpu.memory_space<vmem>>, vector<1x360xf32>
    %478 = vector.broadcast %477 : vector<1x360xf32> to vector<2x360xf32>
    %479 = arith.addf %476, %478 : vector<2x360xf32>
    %c0_91 = arith.constant 0 : index
    %c0_92 = arith.constant 0 : index
    %480 = vector.load %arg10[%c0_91, %c0_92] : memref<2x360xf32, #tpu.memory_space<vmem>>, vector<2x360xf32>
    tpu.vector_store %arg10[%c0_91, %c0_92], %479 {strides = array<i32>} : memref<2x360xf32, #tpu.memory_space<vmem>>, vector<2x360xf32>,
    return
  }
  func.func @transform_0(%arg0: i32) -> (i32, i32) {
    %c0_i32 = arith.constant 0 : i32
    %c0_i32_0 = arith.constant 0 : i32
    %c0_i32_1 = arith.constant 0 : i32
    return %c0_i32, %c0_i32_0 : i32, i32
  }
  func.func @transform_1(%arg0: i32) -> (i32, i32) {
    %c0_i32 = arith.constant 0 : i32
    %c0_i32_0 = arith.constant 0 : i32
    %c0_i32_1 = arith.constant 0 : i32
    return %c0_i32, %c0_i32_0 : i32, i32
  }
  func.func @transform_2(%arg0: i32) -> (i32, i32) {
    %c0_i32 = arith.constant 0 : i32
    %c0_i32_0 = arith.constant 0 : i32
    %c0_i32_1 = arith.constant 0 : i32
    return %c0_i32, %c0_i32_0 : i32, i32
  }
  func.func @transform_3(%arg0: i32) -> (i32, i32) {
    %c0_i32 = arith.constant 0 : i32
    %c0_i32_0 = arith.constant 0 : i32
    %c0_i32_1 = arith.constant 0 : i32
    return %c0_i32, %c0_i32_0 : i32, i32
  }
  func.func @transform_4(%arg0: i32) -> (i32, i32) {
    %c0_i32 = arith.constant 0 : i32
    %c0_i32_0 = arith.constant 0 : i32
    %c0_i32_1 = arith.constant 0 : i32
    return %c0_i32, %c0_i32_0 : i32, i32
  }
  func.func @transform_5(%arg0: i32) -> (i32, i32) {
    %c0_i32 = arith.constant 0 : i32
    %c0_i32_0 = arith.constant 0 : i32
    %c0_i32_1 = arith.constant 0 : i32
    return %c0_i32, %c0_i32_0 : i32, i32
  }
  func.func @transform_6(%arg0: i32) -> (i32, i32) {
    %c0_i32 = arith.constant 0 : i32
    %c0_i32_0 = arith.constant 0 : i32
    %c0_i32_1 = arith.constant 0 : i32
    return %c0_i32, %c0_i32_0 : i32, i32
  }
  func.func @transform_7(%arg0: i32) -> (i32, i32) {
    %c0_i32 = arith.constant 0 : i32
    %c0_i32_0 = arith.constant 0 : i32
    %c0_i32_1 = arith.constant 0 : i32
    return %c0_i32, %c0_i32_0 : i32, i32
  }
  func.func @transform_8(%arg0: i32) -> (i32, i32) {
    %c0_i32 = arith.constant 0 : i32
    %c0_i32_0 = arith.constant 0 : i32
    %c0_i32_1 = arith.constant 0 : i32
    return %c0_i32, %c0_i32_0 : i32, i32
  }
  func.func @transform_9(%arg0: i32) -> (i32, i32) {
    %c0_i32 = arith.constant 0 : i32
    %c0_i32_0 = arith.constant 0 : i32
    %c0_i32_1 = arith.constant 0 : i32
    return %c0_i32, %c0_i32_0 : i32, i32
  }
}

</mosaic_0001>

<bundles_post_ra>
// kernel: rnn_model_forward.1
= control target key start
LH: loop header
LB: loop body
LE: loop exit
PB: predicated region body
PF: predicated region fallthrough
CT: control target
= control target key end

     0   :  { %14 = vsyncpa [#allocation3], 0  ;;  %s4056_s0 = inlined_call_operand.vmem [shape: f32[16,30], index: 0, kind: input, shape index: {}]   ;;  %s4057_s1 = inlined_call_operand.vmem [shape: f32[30,256], index: 1, kind: input, shape index: {}]   ;;  %s4058_s2 = inlined_call_operand.hbm [shape: f32[64,256], index: 2, kind: input, shape index: {}]   ;;  %s4059_s3 = inlined_call_operand.vmem [shape: f32[1,256], index: 3, kind: input, shape index: {}]   ;;  %s4060_s4 = inlined_call_operand.hbm [shape: f32[64,256], index: 4, kind: input, shape index: {}]   ;;  %s4061_s5 = inlined_call_operand.hbm [shape: f32[64,256], index: 5, kind: input, shape index: {}]   ;;  %s4062_s6 = inlined_call_operand.vmem [shape: f32[1,256], index: 6, kind: input, shape index: {}]   ;;  %s4063_s7 = inlined_call_operand.hbm [shape: f32[64,360], index: 7, kind: input, shape index: {}]   ;;  %s4064_s8 = inlined_call_operand.vmem [shape: f32[1,360], index: 8, kind: input, shape index: {}]   ;;  %s4065_s9 = inlined_call_operand.vmem [shape: f32[2,360], index: 9, kind: output, shape index: {}]  }
   0x1   :  { %15 = vsyncpa [#allocation5], 0 }
   0x2   :  { %16 = vsyncpa [#allocation8], 0  ;;  %s3136_s30 = smov [#allocation4]   ;;  %s3137_s11 = smov [#allocation2]  }
   0x3   :  { %s40_s10 = sshll.u32 %s3136_s30, 4  ;;  %s26_s12 = sshll.u32 %s3137_s11, 4  ;;  %s41_s10 = int_to_ptr.vmem [resolvable:$true] %s40_s10  ;;  %s27_s12 = int_to_ptr.vmem [resolvable:$true] %s26_s12 }
   0x4   :  { %s3058_s13 = scalar_lea.vmem %s41_s10, 2048  ;;  %p3063_p1 = scmp.lt.s32.totalorder %s41_s10, %s41_s10 }
   0x5   :  { %p3059_p0 = scmp.ne.s32.totalorder %s41_s10, %s3058_s13  ;;  %p3064_p2 = scmp.lt.s32.totalorder %s3058_s13, %s3058_s13 }
   0x7   :  { %p3065_p3 = por %p3064_p2, %p3063_p1 }
   0x9   :  { %p3066_p4 = pnand %p3065_p3, %p3059_p0 }
   0xb   :  { %3069 = shalt.err (!%p3066_p4)
}
   0xc   :  { %s3138_s14 = smov 256   ;;  %s3139_s15 = smov 16  }
   0xd   :  { %46 = dma.hbm_to_vmem [thread:$0]  %s4060_s4, 2048, %s41_s10, [#allocation5], %s3138_s14, %s3138_s14, %s3139_s15  }
   0xe   :  { %s3078_s18 = scalar_lea.vmem %s27_s12, 2048  ;;  %p3083_p6 = scmp.lt.s32.totalorder %s27_s12, %s27_s12 }
   0xf   :  { %p3079_p5 = scmp.ne.s32.totalorder %s27_s12, %s3078_s18  ;;  %p3084_p7 = scmp.lt.s32.totalorder %s3078_s18, %s3078_s18 }
  0x11   :  { %p3085_p8 = por %p3084_p7, %p3083_p6 }
  0x13   :  { %p3086_p9 = pnand %p3085_p8, %p3079_p5 }
  0x15   :  { %3089 = shalt.err (!%p3086_p9)
}
  0x16   :  { %32 = dma.hbm_to_vmem [thread:$0]  %s4058_s2, 2048, %s27_s12, [#allocation3], %s3138_s14, %s3138_s14, %s3139_s15  }
  0x17   :  { %s3140_s21 = smov [#allocation6]   ;;  %s3141_s23 = smov [#allocation7]  }
  0x18   :  { %s52_s22 = sshll.u32 %s3140_s21, 4  ;;  %s66_s24 = sshll.u32 %s3141_s23, 4  ;;  %s53_s22 = int_to_ptr.vmem [resolvable:$true] %s52_s22  ;;  %s67_s24 = int_to_ptr.vmem [resolvable:$true] %s66_s24 }
  0x19   :  { %s3098_s25 = scalar_lea.vmem %s53_s22, 2048  ;;  %p3103_p11 = scmp.lt.s32.totalorder %s53_s22, %s53_s22 }
  0x1a   :  { %p3099_p10 = scmp.ne.s32.totalorder %s53_s22, %s3098_s25  ;;  %p3104_p12 = scmp.lt.s32.totalorder %s3098_s25, %s3098_s25 }
  0x1c   :  { %p3105_p13 = por %p3104_p12, %p3103_p11 }
  0x1e   :  { %p3106_p0 = pnand %p3105_p13, %p3099_p10 }
  0x20   :  { %3109 = shalt.err (!%p3106_p0)
}
  0x21   :  { %58 = dma.hbm_to_vmem [thread:$0]  %s4061_s5, 2048, %s53_s22, [#allocation5], %s3138_s14, %s3138_s14, %s3139_s15  }
  0x22   :  { %s3118_s27 = scalar_lea.vmem %s67_s24, 3072  ;;  %p3123_p2 = scmp.lt.s32.totalorder %s67_s24, %s67_s24 }
  0x23   :  { %p3119_p1 = scmp.ne.s32.totalorder %s67_s24, %s3118_s27  ;;  %p3124_p3 = scmp.lt.s32.totalorder %s3118_s27, %s3118_s27 }
  0x25   :  { %p3125_p4 = por %p3124_p3, %p3123_p2 }
  0x27   :  { %p3126_p5 = pnand %p3125_p4, %p3119_p1 }
  0x29   :  { %3129 = shalt.err (!%p3126_p5)
}
  0x2a   :  { %s3142_s2 = smov 384   ;;  %s3143_s28 = smov 24  }
  0x2b   :  { %72 = dma.hbm_to_vmem [thread:$0]  %s4063_s7, 3072, %s67_s24, [#allocation8], %s3142_s2, %s3142_s2, %s3143_s28  }
  0x2c   :  { %3130 = dma.done.wait [#allocation3], 2048  }
  0x2d   :  { %3131 = vsyncadd [#allocation3], 4294965248 }
  0x2e   :  { %3132 = dma.done.wait [#allocation5], 4096  }
  0x2f   :  { %3133 = vsyncadd [#allocation5], 4294963200 }
  0x30   :  { %3134 = dma.done.wait [#allocation8], 3072  }
  0x31   :  { %3135 = vsyncadd [#allocation8], 4294964224  ;;  %v4066_v0 = vmov 0.0   ;;  %vm165_vm0 = vcmask 1045504   ;;  %v145_v1 = vld [vmem:[%s4057_s1 + $0x38] sm:$0x3f]  ;;  %v148_v27 = vlaneseq }
  0x32   :  { %236 = vmatprep.mubr.f32.mxu0 %v4066_v0  ;;  %328 = vmatprep.mubr.f32.mxu1 %v4066_v0  ;;  %v144_v2 = vld [vmem:[%s4057_s1 + $0x30] sm:$0x3f]  ;;  %v143_v3 = vld [vmem:[%s4057_s1 + $0x28] sm:$0xff]  ;;  %v142_v4 = vld [vmem:[%s4057_s1 + $0x20] sm:$0xff]  ;;  %vm158_vm1 = vcmask 244736   ;;  %vm260_vm2 = vcmask 523264  }
  0x33   :  { %2710 = vmatprep.subr.msk.mxu0 %vm165_vm0, %v145_v1  ;;  %v141_v5 = vld [vmem:[%s4057_s1 + $0x18] sm:$0xff]  ;;  %v140_v6 = vld [vmem:[%s4057_s1 + $0x10] sm:$0xff]  ;;  %v139_v7 = vld [vmem:[%s4057_s1 + $0x8] sm:$0xff]  ;;  %v3296_v28 = vshrl.u32 %v148_v27, 7  ;;  %vm3146_vm3 = vmmov 0   ;;  %vm2697_vm4 = vcmask 1041408  }
  0x34   :  { %2711 = vmatpush1.msk.msra.mxu0 %vm165_vm0, %v144_v2  ;;  %v138_v8 = vld [vmem:[%s4057_s1] sm:$0xff]  ;;  %v3239_v10 = vld [vmem:[#allocation2 + $0x78] sm:$0xff]  ;;  %v3241_v11 = vld [vmem:[#allocation2 + $0x70] sm:$0xff]  ;;  %vm2698_vm5 = vcmask 1043458   ;;  %vm2700_vm7 = vcmask 848900  }
  0x35   :  { %198 = vmatprep.subr.mxu0 %v143_v3  ;;  %v136_v9 = vld [vmem:[%s4056_s0] sm:$0xff]  ;;  %v3243_v12 = vld [vmem:[#allocation2 + $0x68] sm:$0xff]  ;;  %v3250_v14 = vld [vmem:[#allocation2 + $0x58] sm:$0xff]  ;;  %4090 = vst [vmem:[#allocation12_spill] sm:$0xff] %v3296_v28  ;;  %v3299_v29 = vsub.s32 0, %v3296_v28  ;;  %v3305_v32 = vsub.s32 1, %v3296_v28 }
  0x36   :  { %199 = vmatpush1.msra.mxu0 %v142_v4  ;;  %v3247_v13 = vld [vmem:[#allocation2 + $0x60] sm:$0xff]  ;;  %v137_v15 = vld [vmem:[%s4056_s0 + $0x8] sm:$0xff]  ;;  %v3257_v16 = vld [vmem:[#allocation2 + $0x50] sm:$0xff] }
  0x37   :  { %200 = vmatprep.subr.mxu0 %v141_v5  ;;  %v3260_v17 = vld [vmem:[#allocation2 + $0x48] sm:$0xff]  ;;  %v3263_v18 = vld [vmem:[#allocation2 + $0x40] sm:$0xff]  ;;  %v3267_v19 = vld [vmem:[#allocation2 + $0x38] sm:$0xff]  ;;  %4091 = vst [vmem:[#allocation13_spill] sm:$0xff] %v3299_v29 }
  0x38   :  { %201 = vmatpush1.msra.mxu0 %v140_v6  ;;  %v3271_v20 = vld [vmem:[#allocation2 + $0x30] sm:$0xff]  ;;  %v3274_v21 = vld [vmem:[#allocation2 + $0x28] sm:$0xff]  ;;  %v3277_v22 = vld [vmem:[#allocation2 + $0x20] sm:$0xff]  ;;  %4092 = vst [vmem:[#allocation14_spill] sm:$0xff] %v3305_v32 }
  0x39   :  { %202 = vmatprep.subr.mxu0 %v139_v7  ;;  %v3280_v23 = vld [vmem:[#allocation2 + $0x18] sm:$0xff]  ;;  %v3283_v24 = vld [vmem:[#allocation2 + $0x10] sm:$0xff]  ;;  %v3286_v25 = vld [vmem:[#allocation2 + $0x8] sm:$0xff] }
  0x3a   :  { %203 = vmatpush1.msra.mxu0 %v138_v8  ;;  %v3289_v26 = vld [vmem:[#allocation2] sm:$0xff]  ;;  %v3326_v52 = vld [vmem:[#allocation6 + $0x78] sm:$0xff]  ;;  %v3328_v53 = vld [vmem:[#allocation6 + $0x70] sm:$0xff] }
  0x3b   :  { %2712 = vmatmul.mubr.msk.f32.vlgmr.msra.gmra.mxu0 %vm158_vm1, %v136_v9  ;;  %351 = vmatprep.subr.mxu0 %v3239_v10  ;;  %v146_v30 = vld [vmem:[%s4059_s3] sm:$0x3]  ;;  %s3145_s3 = smov 64   ;;  %v3330_v54 = vld [vmem:[#allocation6 + $0x68] sm:$0xff]  ;;  %v3337_v56 = vld [vmem:[#allocation6 + $0x58] sm:$0xff] }
  0x3c   :  { %352 = vmatpush1.msra.mxu0 %v3241_v11  ;;  %242 = vmatprep.mubr.f32.mxu0 %v4066_v0  ;;  %v151_v34 = vrot.slane %v146_v30, %v3299_v29  ;;  %v155_v36 = vrot.slane %v146_v30, %v3305_v32  ;;  %v3333_v55 = vld [vmem:[#allocation6 + $0x60] sm:$0xff]  ;;  %v3341_v57 = vld [vmem:[#allocation6 + $0x50] sm:$0xff]  ;;  %v3345_v58 = vld [vmem:[#allocation6 + $0x48] sm:$0xff] }
  0x3d   :  { %353 = vmatprep.subr.mxu0 %v3243_v12  ;;  %280 = vmatprep.subr.mxu1 %v3326_v52  ;;  %v3349_v59 = vld [vmem:[#allocation6 + $0x40] sm:$0xff]  ;;  %v3353_v60 = vld [vmem:[#allocation6 + $0x38] sm:$0xff]  ;;  %v3357_v61 = vld [vmem:[#allocation6 + $0x30] sm:$0xff] }
  0x3e   :  { %354 = vmatpush1.msra.mxu0 %v3247_v13  ;;  %281 = vmatpush1.msra.mxu1 %v3328_v53  ;;  %v3361_v62 = vld [vmem:[#allocation6 + $0x28] sm:$0xff]  ;;  %v3365_v63 = vld [vmem:[#allocation6 + $0x20] sm:$0xff]  ;;  %v3369_v1 = vld [vmem:[#allocation6 + $0x18] sm:$0xff] }
  0x3f   :  { %355 = vmatprep.subr.mxu0 %v3250_v14  ;;  %2713 = vmatmul.mubr.msk.f32.gmra.mxu0 %vm158_vm1, %v137_v15  ;;  %4095 = vst [vmem:[#allocation17_spill] sm:$0xff] %v3361_v62  ;;  %4096 = vst [vmem:[#allocation18_spill] sm:$0xff] %v3365_v63  ;;  %v3373_v2 = vld [vmem:[#allocation6 + $0x10] sm:$0xff]  ;;  %v3377_v3 = vld [vmem:[#allocation6 + $0x8] sm:$0xff] }
  0x40   :  { %356 = vmatpush1.msra.mxu0 %v3257_v16  ;;  %399 = vmatprep.mubr.f32.mxu0 %v4066_v0  ;;  %4097 = vst [vmem:[#allocation19_spill] sm:$0xff] %v3369_v1  ;;  %4098 = vst [vmem:[#allocation20_spill] sm:$0xff] %v3373_v2  ;;  %v3381_v4 = vld [vmem:[#allocation6] sm:$0xff]  ;;  %v3385_v5 = vld [vmem:[#allocation4 + $0x78] sm:$0xff] }
  0x41   :  { %357 = vmatprep.subr.mxu0 %v3260_v17  ;;  %282 = vmatprep.subr.mxu1 %v3330_v54  ;;  %4099 = vst [vmem:[#allocation21_spill] sm:$0xff] %v3377_v3  ;;  %4100 = vst [vmem:[#allocation22_spill] sm:$0xff] %v3381_v4  ;;  %v3389_v6 = vld [vmem:[#allocation4 + $0x70] sm:$0xff]  ;;  %v3393_v7 = vld [vmem:[#allocation4 + $0x68] sm:$0xff] }
  0x42   :  { %358 = vmatpush1.msra.mxu0 %v3263_v18  ;;  %283 = vmatpush1.msra.mxu1 %v3333_v55  ;;  %4101 = vst [vmem:[#allocation23_spill] sm:$0xff] %v3385_v5  ;;  %v3398_v8 = vld [vmem:[#allocation4 + $0x60] sm:$0xff]  ;;  %v3401_v9 = vld [vmem:[#allocation4 + $0x58] sm:$0xff]  ;;  %v3405_v15 = vld [vmem:[#allocation4 + $0x50] sm:$0xff] }
  0x43   :  { %359 = vmatprep.subr.mxu0 %v3267_v19  ;;  %284 = vmatprep.subr.mxu1 %v3337_v56  ;;  %v3409_v27 = vld [vmem:[#allocation4 + $0x48] sm:$0xff]  ;;  %v3412_v30 = vld [vmem:[#allocation4 + $0x40] sm:$0xff]  ;;  %vm2699_vm6 = vmor %vm2698_vm5, %vm2697_vm4 }
  0x44   :  { %360 = vmatpush1.msra.mxu0 %v3271_v20  ;;  %285 = vmatpush1.msra.mxu1 %v3341_v57  ;;  %vm2701_vm8 = vmor %vm2700_vm7, %vm2699_vm6 }
  0x45   :  { %361 = vmatprep.subr.mxu0 %v3274_v21  ;;  %286 = vmatprep.subr.mxu1 %v3345_v58 }
  0x46   :  { %362 = vmatpush1.msra.mxu0 %v3277_v22  ;;  %287 = vmatpush1.msra.mxu1 %v3349_v59 }
  0x47   :  { %363 = vmatprep.subr.mxu0 %v3280_v23  ;;  %288 = vmatprep.subr.mxu1 %v3353_v60 }
  0x48   :  { %364 = vmatpush1.msra.mxu0 %v3283_v24  ;;  %289 = vmatpush1.msra.mxu1 %v3357_v61 }
  0x49   :  { %365 = vmatprep.subr.mxu0 %v3286_v25  ;;  %290 = vmatprep.subr.mxu1 %v3361_v62 }
  0x4a   :  { %366 = vmatpush1.msra.mxu0 %v3289_v26  ;;  %291 = vmatpush1.msra.mxu1 %v3365_v63 }
  0x4b   :  { %400 = vmatmul.mubr.f32.vlgmr.msra.gmra.mxu0 %v4066_v0  ;;  %551 = vmatprep.subr.mxu0 %v3326_v52 }
  0x4c   :  { %599 = vmatprep.mubr.f32.mxu0 %v4066_v0  ;;  %552 = vmatpush1.msra.mxu0 %v3328_v53 }
  0x4d   :  { %553 = vmatprep.subr.mxu0 %v3330_v54  ;;  %292 = vmatprep.subr.mxu1 %v3369_v1 }
  0x4e   :  { %554 = vmatpush1.msra.mxu0 %v3333_v55  ;;  %293 = vmatpush1.msra.mxu1 %v3373_v2 }
  0x4f   :  { %555 = vmatprep.subr.mxu0 %v3337_v56  ;;  %294 = vmatprep.subr.mxu1 %v3377_v3 }
  0x50   :  { %556 = vmatpush1.msra.mxu0 %v3341_v57  ;;  %295 = vmatpush1.msra.mxu1 %v3381_v4 }
  0x51   :  { %557 = vmatprep.subr.mxu0 %v3345_v58  ;;  %329 = vmatmul.mubr.f32.vlgmr.msra.gmra.mxu1 %v4066_v0 }
  0x52   :  { %558 = vmatpush1.msra.mxu0 %v3349_v59  ;;  %451 = vmatprep.subr.mxu1 %v3385_v5 }
  0x53   :  { %559 = vmatprep.subr.mxu0 %v3353_v60  ;;  %452 = vmatpush1.msra.mxu1 %v3389_v6 }
  0x54   :  { %560 = vmatpush1.msra.mxu0 %v3357_v61  ;;  %499 = vmatprep.mubr.f32.mxu1 %v4066_v0 }
  0x55   :  { %561 = vmatprep.subr.mxu0 %v3361_v62  ;;  %453 = vmatprep.subr.mxu1 %v3393_v7 }
  0x56   :  { %562 = vmatpush1.msra.mxu0 %v3365_v63  ;;  %454 = vmatpush1.msra.mxu1 %v3398_v8 }
  0x57   :  { %563 = vmatprep.subr.mxu0 %v3369_v1  ;;  %455 = vmatprep.subr.mxu1 %v3401_v9 }
  0x58   :  { %564 = vmatpush1.msra.mxu0 %v3373_v2  ;;  %456 = vmatpush1.msra.mxu1 %v3405_v15 }
  0x59   :  { %565 = vmatprep.subr.mxu0 %v3377_v3  ;;  %457 = vmatprep.subr.mxu1 %v3409_v27 }
  0x5a   :  { %566 = vmatpush1.msra.mxu0 %v3381_v4  ;;  %458 = vmatpush1.msra.mxu1 %v3412_v30 }
  0x5b   :  { %732 = vmatprep.subr.mxu0 %v3385_v5 }
  0xfb   :  { %v238_v31 = vpop.f32.mrf.mxu0 }
  0xfc   :  { %v3313_v40 = vadd.f32 %v238_v31, %v151_v34  ;;  %v3415_v31 = vld [vmem:[#allocation4 + $0x38] sm:$0xff] }
  0xfd   :  { %v240_v33 = vpop.f32.mrf.mxu0  ;;  %459 = vmatprep.subr.mxu1 %v3415_v31 }
  0xfe   :  { %v3316_v45 = vadd.f32 %v240_v33, %v155_v36  ;;  %v3418_v33 = vld [vmem:[#allocation4 + $0x30] sm:$0xff] }
  0xff   :  { %v244_v35 = vpop.f32.mrf.mxu0  ;;  %460 = vmatpush1.msra.mxu1 %v3418_v33 }
 0x100   :  { %v3309_v37 = vadd.f32 %v244_v35, %v151_v34  ;;  %v3421_v34 = vld [vmem:[#allocation4 + $0x28] sm:$0xff]  ;;  %v3424_v35 = vld [vmem:[#allocation4 + $0x20] sm:$0xff] }
 0x101   :  { %v246_v38 = vpop.f32.mrf.mxu0  ;;  %461 = vmatprep.subr.mxu1 %v3421_v34 }
 0x102   :  { %4093 = vst [vmem:[#allocation15_spill] sm:$0xff] %v3309_v37  ;;  %v3311_v39 = vadd.f32 %v246_v38, %v155_v36  ;;  %v3427_v36 = vld [vmem:[#allocation4 + $0x18] sm:$0xff]  ;;  %v3430_v38 = vld [vmem:[#allocation4 + $0x10] sm:$0xff]  ;;  %462 = vmatpush1.msra.mxu1 %v3424_v35 }
 0x103   :  { %463 = vmatprep.subr.mxu1 %v3427_v36 }
 0x104   :  { %4094 = vst [vmem:[#allocation16_spill] sm:$0xff] %v3311_v39  ;;  %464 = vmatpush1.msra.mxu1 %v3430_v38 }
 0x10b   :  { %v401_v41 = vpop.f32.mrf.mxu0 }
 0x10c   :  { %v406_v42 = vadd.f32 %v401_v41, %v3313_v40  ;;  %v3433_v41 = vld [vmem:[#allocation4 + $0x8] sm:$0xff] }
 0x10d   :  { %v403_v44 = vpop.f32.mrf.mxu0  ;;  %465 = vmatprep.subr.mxu1 %v3433_v41 }
 0x10e   :  { %v2714_v43 = vmul.f32 -1.442695, %v406_v42  ;;  %v3319_v46 = vadd.f32 %v403_v44, %v3316_v45  ;;  %v3436_v42 = vld [vmem:[#allocation4] sm:$0xff] }
 0x10f   :  { %466 = vmatpush1.msra.mxu1 %v3436_v42 }
 0x110   :  { %2810 = vpow2.f32 %v2714_v43  ;;  %622 = vmatprep.subr.mxu1 %v3239_v10  ;;  %v2715_v43 = vmul.f32 -1.442695, %v3319_v46 }
 0x111   :  { %2812 = vtanh.f32 %v3319_v46  ;;  %v4102_v46 = vmov 0.0  }
 0x11d   :  { %v2811_v47 = vpop.eup %2810 }
 0x11e   :  { %v411_v48 = vadd.f32 1.0, %v2811_v47  ;;  %v2813_v49 = vpop.eup %2812 }
 0x120   :  { %2814 = vrcp.f32 %v411_v48 }
 0x121   :  { %2816 = vpow2.f32 %v2715_v43 }
 0x12d   :  { %v3322_v50 = vpop.eup %2814 }
 0x12e   :  { %v422_v51 = vmul.f32 %v3322_v50, %v2813_v49  ;;  %v2817_v44 = vpop.eup %2816  ;;  %v421_v48 = vmul.f32 0.0, %v3322_v50 }
 0x12f   :  { %v418_v47 = vadd.f32 1.0, %v2817_v44 }
 0x130   :  { %424 = vrot.lane.b32.xlu0 %v422_v51, %s3145_s3 }
 0x131   :  { %2818 = vrcp.f32 %v418_v47 }
 0x13e   :  { %v2819_v0 = vpop.eup %2818 }
 0x1a2   :  { %v425_v49 = vpop.permute.xlu0 %424 }
 0x1a3   :  { %v3444_v51 = vadd.f32 %v425_v49, %v421_v48 }
 0x1a5   :  { %2820 = vtanh.f32 %v3444_v51 }
 0x1b2   :  { %v2821_v28 = vpop.eup %2820 }
 0x1b3   :  { %v429_v39 = vmul.f32 %v2821_v28, %v2819_v0  ;;  %v135_v0 = vld [vmem:[%s4062_s6] sm:$0x3]  ;;  %v330_v28 = vpop.f32.mrf.mxu1 }
 0x1b4   :  { %v3492_v48 = vrot.slane %v135_v0, %v3305_v32 }
 0x1b5   :  { %431 = vrot.lane.b32.xlu0 %v429_v39, %s3145_s3  ;;  %v332_v39 = vpop.f32.mrf.mxu1 }
 0x227   :  { %v432_v37 = vpop.permute.xlu0 %431 }
 0x228   :  { %2716 = vmatmul.mubr.msk.f32.vlgmr.msra.gmra.mxu1 %vm260_vm2, %v432_v37 }
 0x229   :  { %623 = vmatpush1.msra.mxu1 %v3241_v11  ;;  %670 = vmatprep.mubr.f32.mxu1 %v4102_v46 }
 0x22a   :  { %624 = vmatprep.subr.mxu1 %v3243_v12 }
 0x22b   :  { %625 = vmatpush1.msra.mxu1 %v3247_v13 }
 0x22c   :  { %626 = vmatprep.subr.mxu1 %v3250_v14 }
 0x22d   :  { %627 = vmatpush1.msra.mxu1 %v3257_v16 }
 0x22e   :  { %628 = vmatprep.subr.mxu1 %v3260_v17 }
 0x22f   :  { %629 = vmatpush1.msra.mxu1 %v3263_v18 }
 0x230   :  { %630 = vmatprep.subr.mxu1 %v3267_v19 }
 0x231   :  { %631 = vmatpush1.msra.mxu1 %v3271_v20 }
 0x232   :  { %632 = vmatprep.subr.mxu1 %v3274_v21 }
 0x233   :  { %633 = vmatpush1.msra.mxu1 %v3277_v22 }
 0x234   :  { %634 = vmatprep.subr.mxu1 %v3280_v23 }
 0x235   :  { %635 = vmatpush1.msra.mxu1 %v3283_v24 }
 0x236   :  { %636 = vmatprep.subr.mxu1 %v3286_v25 }
 0x237   :  { %637 = vmatpush1.msra.mxu1 %v3289_v26 }
 0x238   :  { %2720 = vmatmul.mubr.msk.f32.vlgmr.msra.gmra.mxu1 %vm260_vm2, %v432_v37  ;;  %832 = vmatprep.subr.mxu1 %v3326_v52  ;;  %v3488_v37 = vrot.slane %v135_v0, %v3299_v29 }
 0x239   :  { %833 = vmatpush1.msra.mxu1 %v3328_v53  ;;  %880 = vmatprep.mubr.f32.mxu1 %v4102_v46 }
 0x23a   :  { %834 = vmatprep.subr.mxu1 %v3330_v54  ;;  %4103 = vst [vmem:[#allocation24_spill] sm:$0xff] %v3488_v37  ;;  %v331_v50 = vadd.f32 %v330_v28, %v3488_v37 }
 0x23b   :  { %835 = vmatpush1.msra.mxu1 %v3333_v55 }
 0x23c   :  { %836 = vmatprep.subr.mxu1 %v3337_v56 }
 0x23d   :  { %837 = vmatpush1.msra.mxu1 %v3341_v57 }
 0x23e   :  { %838 = vmatprep.subr.mxu1 %v3345_v58 }
 0x23f   :  { %839 = vmatpush1.msra.mxu1 %v3349_v59 }
 0x240   :  { %840 = vmatprep.subr.mxu1 %v3353_v60 }
 0x241   :  { %841 = vmatpush1.msra.mxu1 %v3357_v61 }
 0x242   :  { %842 = vmatprep.subr.mxu1 %v3361_v62 }
 0x243   :  { %843 = vmatpush1.msra.mxu1 %v3365_v63 }
 0x244   :  { %844 = vmatprep.subr.mxu1 %v3369_v1 }
 0x245   :  { %845 = vmatpush1.msra.mxu1 %v3373_v2 }
 0x246   :  { %846 = vmatprep.subr.mxu1 %v3377_v3 }
 0x247   :  { %847 = vmatpush1.msra.mxu1 %v3381_v4 }
 0x248   :  { %1013 = vmatprep.subr.mxu1 %v3385_v5  ;;  %v333_v5 = vadd.f32 %v332_v39, %v3492_v48 }
 0x2e8   :  { %v501_v43 = vpop.f32.mrf.mxu1 }
 0x2e9   :  { %v506_v44 = vadd.f32 %v501_v43, %v331_v50 }
 0x2ea   :  { %v503_v49 = vpop.f32.mrf.mxu1 }
 0x2eb   :  { %v2717_v47 = vmul.f32 -1.442695, %v506_v44  ;;  %v507_v4 = vadd.f32 %v503_v49, %v333_v5 }
 0x2ed   :  { %2822 = vpow2.f32 %v2717_v47  ;;  %v2718_v39 = vmul.f32 -1.442695, %v507_v4 }
 0x2ee   :  { %2824 = vtanh.f32 %v507_v4 }
 0x2f8   :  { %v672_v3 = vpop.f32.mrf.mxu1 }
 0x2f9   :  { %v679_v2 = vrot.slane %v672_v3, 6 }
 0x2fa   :  { %v2823_v1 = vpop.eup %2822  ;;  %v674_v50 = vpop.f32.mrf.mxu1 }
 0x2fb   :  { %v511_v63 = vadd.f32 1.0, %v2823_v1  ;;  %v683_v29 = vadd.f32 %v679_v2, %v3313_v40  ;;  %v680_v43 = vrot.slane %v674_v50, 6  ;;  %v2825_v44 = vpop.eup %2824  ;;  %v699_v2 = vrot.slane %v3444_v51, 6 }
 0x2fd   :  { %2826 = vrcp.f32 %v511_v63  ;;  %v2721_v28 = vmul.f32 -1.442695, %v683_v29  ;;  %v684_v0 = vadd.f32 %v680_v43, %v3316_v45 }
 0x2ff   :  { %2828 = vpow2.f32 %v2721_v28  ;;  %v2722_v28 = vmul.f32 -1.442695, %v684_v0 }
 0x300   :  { %2830 = vtanh.f32 %v684_v0 }
 0x30a   :  { %v2827_v47 = vpop.eup %2826 }
 0x30b   :  { %v522_v32 = vmul.f32 %v2827_v47, %v2825_v44  ;;  %v521_v43 = vmul.f32 0.0, %v2827_v47 }
 0x30c   :  { %v2829_v37 = vpop.eup %2828 }
 0x30d   :  { %524 = vrot.lane.b32.xlu1 %v522_v32, %s3145_s3  ;;  %v688_v5 = vadd.f32 1.0, %v2829_v37  ;;  %v2831_v1 = vpop.eup %2830 }
 0x30f   :  { %2832 = vrcp.f32 %v688_v5 }
 0x310   :  { %2834 = vpow2.f32 %v2718_v39 }
 0x311   :  { %2836 = vpow2.f32 %v2722_v28  ;;  %v4104_v28 = vld [vmem:[#allocation18_spill] sm:$0xff] }
 0x31c   :  { %v2833_v3 = vpop.eup %2832 }
 0x31d   :  { %v702_v63 = vmul.f32 %v2833_v3, %v2831_v1  ;;  %v701_v29 = vmul.f32 %v2833_v3, %v699_v2  ;;  %v2835_v49 = vpop.eup %2834 }
 0x31e   :  { %v518_v50 = vadd.f32 1.0, %v2835_v49  ;;  %v2837_v37 = vpop.eup %2836 }
 0x31f   :  { %704 = vrot.lane.b32.xlu1 %v702_v63, %s3145_s3  ;;  %v695_v1 = vadd.f32 1.0, %v2837_v37  ;;  %v4108_v37 = vld [vmem:[#allocation22_spill] sm:$0xff] }
 0x320   :  { %2838 = vrcp.f32 %v518_v50  ;;  %v4105_v50 = vld [vmem:[#allocation19_spill] sm:$0xff] }
 0x32d   :  { %v2839_v51 = vpop.eup %2838 }
 0x37f   :  { %v525_v44 = vpop.permute.xlu1 %524 }
 0x380   :  { %v3500_v32 = vadd.f32 %v525_v44, %v521_v43  ;;  %v4106_v43 = vld [vmem:[#allocation20_spill] sm:$0xff]  ;;  %v4107_v44 = vld [vmem:[#allocation21_spill] sm:$0xff] }
 0x382   :  { %2840 = vtanh.f32 %v3500_v32 }
 0x383   :  { %2842 = vrcp.f32 %v695_v1 }
 0x38f   :  { %v2841_v5 = vpop.eup %2840 }
 0x390   :  { %v529_v2 = vmul.f32 %v2841_v5, %v2839_v51  ;;  %v2843_v47 = vpop.eup %2842  ;;  %v4109_v51 = vld [vmem:[#allocation23_spill] sm:$0xff] }
 0x391   :  { %v705_v3 = vpop.permute.xlu1 %704 }
 0x392   :  { %531 = vrot.lane.b32.xlu0 %v529_v2, %s3145_s3  ;;  %v3504_v4 = vadd.f32 %v705_v3, %v701_v29  ;;  %v4110_v2 = vld [vmem:[#allocation24_spill] sm:$0xff] }
 0x394   :  { %2844 = vtanh.f32 %v3504_v4 }
 0x3a1   :  { %v2845_v0 = vpop.eup %2844 }
 0x3a2   :  { %v709_v63 = vmul.f32 %v2845_v0, %v2843_v47 }
 0x3a4   :  { %v711_v39 = vrot.slane %v709_v63, 2 }
 0x3a6   :  { %712 = vrot.lane.b32.xlu1 %v711_v39, %s3145_s3 }
 0x404   :  { %v532_v49 = vpop.permute.xlu0 %531 }
 0x405   :  { %2719 = vmatmul.mubr.msk.f32.vlgmr.msra.gmra.mxu0 %vm260_vm2, %v532_v49 }
 0x406   :  { %733 = vmatpush1.msra.mxu0 %v3389_v6  ;;  %780 = vmatprep.mubr.f32.mxu0 %v4102_v46 }
 0x407   :  { %734 = vmatprep.subr.mxu0 %v3393_v7 }
 0x408   :  { %735 = vmatpush1.msra.mxu0 %v3398_v8 }
 0x409   :  { %736 = vmatprep.subr.mxu0 %v3401_v9 }
 0x40a   :  { %737 = vmatpush1.msra.mxu0 %v3405_v15 }
 0x40b   :  { %738 = vmatprep.subr.mxu0 %v3409_v27 }
 0x40c   :  { %739 = vmatpush1.msra.mxu0 %v3412_v30 }
 0x40d   :  { %740 = vmatprep.subr.mxu0 %v3415_v31 }
 0x40e   :  { %741 = vmatpush1.msra.mxu0 %v3418_v33 }
 0x40f   :  { %742 = vmatprep.subr.mxu0 %v3421_v34 }
 0x410   :  { %743 = vmatpush1.msra.mxu0 %v3424_v35 }
 0x411   :  { %744 = vmatprep.subr.mxu0 %v3427_v36 }
 0x412   :  { %745 = vmatpush1.msra.mxu0 %v3430_v38 }
 0x413   :  { %746 = vmatprep.subr.mxu0 %v3433_v41 }
 0x414   :  { %747 = vmatpush1.msra.mxu0 %v3436_v42 }
 0x415   :  { %903 = vmatprep.subr.mxu0 %v3239_v10 }
 0x418   :  { %v713_v29 = vpop.permute.xlu1 %712 }
 0x419   :  { %2723 = vmatmul.mubr.msk.f32.vlgmr.msra.gmra.mxu0 %vm260_vm2, %v713_v29 }
 0x41a   :  { %904 = vmatpush1.msra.mxu0 %v3241_v11  ;;  %951 = vmatprep.mubr.f32.mxu0 %v4102_v46 }
 0x41b   :  { %905 = vmatprep.subr.mxu0 %v3243_v12 }
 0x41c   :  { %906 = vmatpush1.msra.mxu0 %v3247_v13 }
 0x41d   :  { %907 = vmatprep.subr.mxu0 %v3250_v14 }
 0x41e   :  { %908 = vmatpush1.msra.mxu0 %v3257_v16 }
 0x41f   :  { %909 = vmatprep.subr.mxu0 %v3260_v17 }
 0x420   :  { %910 = vmatpush1.msra.mxu0 %v3263_v18 }
 0x421   :  { %911 = vmatprep.subr.mxu0 %v3267_v19 }
 0x422   :  { %912 = vmatpush1.msra.mxu0 %v3271_v20 }
 0x423   :  { %913 = vmatprep.subr.mxu0 %v3274_v21 }
 0x424   :  { %914 = vmatpush1.msra.mxu0 %v3277_v22 }
 0x425   :  { %915 = vmatprep.subr.mxu0 %v3280_v23 }
 0x426   :  { %916 = vmatpush1.msra.mxu0 %v3283_v24 }
 0x427   :  { %917 = vmatprep.subr.mxu0 %v3286_v25 }
 0x428   :  { %918 = vmatpush1.msra.mxu0 %v3289_v26 }
 0x429   :  { %2727 = vmatmul.mubr.msk.f32.vlgmr.msra.gmra.mxu0 %vm260_vm2, %v713_v29  ;;  %1113 = vmatprep.subr.mxu0 %v3326_v52 }
 0x42a   :  { %1114 = vmatpush1.msra.mxu0 %v3328_v53  ;;  %1161 = vmatprep.mubr.f32.mxu0 %v4102_v46 }
 0x42b   :  { %1115 = vmatprep.subr.mxu0 %v3330_v54 }
 0x42c   :  { %1116 = vmatpush1.msra.mxu0 %v3333_v55 }
 0x42d   :  { %1117 = vmatprep.subr.mxu0 %v3337_v56 }
 0x42e   :  { %1118 = vmatpush1.msra.mxu0 %v3341_v57 }
 0x42f   :  { %1119 = vmatprep.subr.mxu0 %v3345_v58 }
 0x430   :  { %1120 = vmatpush1.msra.mxu0 %v3349_v59 }
 0x431   :  { %1121 = vmatprep.subr.mxu0 %v3353_v60 }
 0x432   :  { %1122 = vmatpush1.msra.mxu0 %v3357_v61 }
 0x433   :  { %1123 = vmatprep.subr.mxu0 %v3361_v62 }
 0x434   :  { %1124 = vmatpush1.msra.mxu0 %v4104_v28 }
 0x435   :  { %1125 = vmatprep.subr.mxu0 %v4105_v50 }
 0x436   :  { %1126 = vmatpush1.msra.mxu0 %v4106_v43 }
 0x437   :  { %1127 = vmatprep.subr.mxu0 %v4107_v44 }
 0x438   :  { %1128 = vmatpush1.msra.mxu0 %v4108_v37 }
 0x439   :  { %1294 = vmatprep.subr.mxu0 %v4109_v51 }
 0x4c5   :  { %v601_v5 = vpop.f32.mrf.mxu0 }
 0x4c6   :  { %v602_v3 = vadd.f32 %v601_v5, %v4110_v2 }
 0x4c7   :  { %v603_v1 = vpop.f32.mrf.mxu0 }
 0x4c8   :  { %v604_v49 = vadd.f32 %v603_v1, %v3492_v48 }
 0x4d9   :  { %v782_v47 = vpop.f32.mrf.mxu0 }
 0x4da   :  { %v787_v0 = vadd.f32 %v782_v47, %v602_v3 }
 0x4db   :  { %v784_v39 = vpop.f32.mrf.mxu0 }
 0x4dc   :  { %v2724_v63 = vmul.f32 -1.442695, %v787_v0  ;;  %v788_v29 = vadd.f32 %v784_v39, %v604_v49 }
 0x4de   :  { %2846 = vpow2.f32 %v2724_v63 }
 0x4df   :  { %2848 = vtanh.f32 %v788_v29 }
 0x4e9   :  { %v953_v50 = vpop.f32.mrf.mxu0 }
 0x4ea   :  { %v960_v43 = vrot.slane %v953_v50, 4  ;;  %v980_v50 = vrot.slane %v3504_v4, 6 }
 0x4eb   :  { %v2847_v28 = vpop.eup %2846  ;;  %v955_v62 = vpop.f32.mrf.mxu0 }
 0x4ec   :  { %v792_v44 = vadd.f32 1.0, %v2847_v28  ;;  %v964_v37 = vadd.f32 %v960_v43, %v3313_v40  ;;  %v961_v5 = vrot.slane %v955_v62, 4  ;;  %v2849_v2 = vpop.eup %2848  ;;  %v2725_v62 = vmul.f32 -1.442695, %v788_v29 }
 0x4ee   :  { %2850 = vrcp.f32 %v792_v44  ;;  %v2728_v51 = vmul.f32 -1.442695, %v964_v37  ;;  %v965_v47 = vadd.f32 %v961_v5, %v3316_v45 }
 0x4f0   :  { %2852 = vpow2.f32 %v2728_v51  ;;  %v2729_v39 = vmul.f32 -1.442695, %v965_v47 }
 0x4f1   :  { %2854 = vtanh.f32 %v965_v47 }
 0x4fb   :  { %v2851_v3 = vpop.eup %2850 }
 0x4fc   :  { %v803_v0 = vmul.f32 %v2851_v3, %v2849_v2  ;;  %v802_v2 = vmul.f32 %v2851_v3, %v3500_v32 }
 0x4fd   :  { %v2853_v63 = vpop.eup %2852 }
 0x4fe   :  { %805 = vrot.lane.b32.xlu0 %v803_v0, %s3145_s3  ;;  %v969_v1 = vadd.f32 1.0, %v2853_v63  ;;  %v2855_v28 = vpop.eup %2854 }
 0x500   :  { %2856 = vrcp.f32 %v969_v1 }
 0x501   :  { %2858 = vpow2.f32 %v2725_v62 }
 0x502   :  { %2860 = vpow2.f32 %v2729_v39 }
 0x50d   :  { %v2857_v43 = vpop.eup %2856 }
 0x50e   :  { %v983_v44 = vmul.f32 %v2857_v43, %v2855_v28  ;;  %v982_v37 = vmul.f32 %v2857_v43, %v980_v50  ;;  %v2859_v51 = vpop.eup %2858 }
 0x50f   :  { %v799_v49 = vadd.f32 1.0, %v2859_v51  ;;  %v2861_v4 = vpop.eup %2860 }
 0x510   :  { %985 = vrot.lane.b32.xlu1 %v983_v44, %s3145_s3  ;;  %v976_v28 = vadd.f32 1.0, %v2861_v4 }
 0x511   :  { %2862 = vrcp.f32 %v799_v49 }
 0x51e   :  { %v2863_v63 = vpop.eup %2862 }
 0x570   :  { %v806_v5 = vpop.permute.xlu0 %805 }
 0x571   :  { %v3570_v0 = vadd.f32 %v806_v5, %v802_v2 }
 0x573   :  { %2864 = vtanh.f32 %v3570_v0 }
 0x574   :  { %2866 = vrcp.f32 %v976_v28 }
 0x580   :  { %v2865_v1 = vpop.eup %2864 }
 0x581   :  { %v810_v50 = vmul.f32 %v2865_v1, %v2863_v63  ;;  %v2867_v32 = vpop.eup %2866 }
 0x582   :  { %v986_v43 = vpop.permute.xlu1 %985 }
 0x583   :  { %812 = vrot.lane.b32.xlu0 %v810_v50, %s3145_s3  ;;  %v3574_v29 = vadd.f32 %v986_v43, %v982_v37 }
 0x585   :  { %2868 = vtanh.f32 %v3574_v29 }
 0x592   :  { %v2869_v3 = vpop.eup %2868 }
 0x593   :  { %v990_v47 = vmul.f32 %v2869_v3, %v2867_v32 }
 0x595   :  { %v992_v44 = vrot.slane %v990_v47, 4 }
 0x597   :  { %993 = vrot.lane.b32.xlu1 %v992_v44, %s3145_s3 }
 0x5f5   :  { %v813_v62 = vpop.permute.xlu0 %812 }
 0x5f6   :  { %2726 = vmatmul.mubr.msk.f32.vlgmr.msra.gmra.mxu1 %vm260_vm2, %v813_v62 }
 0x5f7   :  { %1014 = vmatpush1.msra.mxu1 %v3389_v6  ;;  %1061 = vmatprep.mubr.f32.mxu1 %v4102_v46 }
 0x5f8   :  { %1015 = vmatprep.subr.mxu1 %v3393_v7 }
 0x5f9   :  { %1016 = vmatpush1.msra.mxu1 %v3398_v8 }
 0x5fa   :  { %1017 = vmatprep.subr.mxu1 %v3401_v9 }
 0x5fb   :  { %1018 = vmatpush1.msra.mxu1 %v3405_v15 }
 0x5fc   :  { %1019 = vmatprep.subr.mxu1 %v3409_v27 }
 0x5fd   :  { %1020 = vmatpush1.msra.mxu1 %v3412_v30 }
 0x5fe   :  { %1021 = vmatprep.subr.mxu1 %v3415_v31 }
 0x5ff   :  { %1022 = vmatpush1.msra.mxu1 %v3418_v33 }
 0x600   :  { %1023 = vmatprep.subr.mxu1 %v3421_v34 }
 0x601   :  { %1024 = vmatpush1.msra.mxu1 %v3424_v35 }
 0x602   :  { %1025 = vmatprep.subr.mxu1 %v3427_v36 }
 0x603   :  { %1026 = vmatpush1.msra.mxu1 %v3430_v38 }
 0x604   :  { %1027 = vmatprep.subr.mxu1 %v3433_v41 }
 0x605   :  { %1028 = vmatpush1.msra.mxu1 %v3436_v42 }
 0x606   :  { %1184 = vmatprep.subr.mxu1 %v3239_v10  ;;  %v4111_v10 = vld [vmem:[#allocation17_spill] sm:$0xff] }
 0x609   :  { %v994_v37 = vpop.permute.xlu1 %993 }
 0x60a   :  { %2730 = vmatmul.mubr.msk.f32.vlgmr.msra.gmra.mxu1 %vm260_vm2, %v994_v37 }
 0x60b   :  { %1185 = vmatpush1.msra.mxu1 %v3241_v11  ;;  %1232 = vmatprep.mubr.f32.mxu1 %v4102_v46  ;;  %v4112_v11 = vld [vmem:[#allocation18_spill] sm:$0xff] }
 0x60c   :  { %1186 = vmatprep.subr.mxu1 %v3243_v12  ;;  %v4113_v12 = vld [vmem:[#allocation19_spill] sm:$0xff] }
 0x60d   :  { %1187 = vmatpush1.msra.mxu1 %v3247_v13  ;;  %v4114_v13 = vld [vmem:[#allocation20_spill] sm:$0xff] }
 0x60e   :  { %1188 = vmatprep.subr.mxu1 %v3250_v14  ;;  %v4115_v14 = vld [vmem:[#allocation21_spill] sm:$0xff] }
 0x60f   :  { %1189 = vmatpush1.msra.mxu1 %v3257_v16  ;;  %v4116_v16 = vld [vmem:[#allocation22_spill] sm:$0xff] }
 0x610   :  { %1190 = vmatprep.subr.mxu1 %v3260_v17  ;;  %v4117_v17 = vld [vmem:[#allocation23_spill] sm:$0xff] }
 0x611   :  { %1191 = vmatpush1.msra.mxu1 %v3263_v18 }
 0x612   :  { %1192 = vmatprep.subr.mxu1 %v3267_v19 }
 0x613   :  { %1193 = vmatpush1.msra.mxu1 %v3271_v20  ;;  %v4118_v20 = vld [vmem:[#allocation24_spill] sm:$0xff] }
 0x614   :  { %1194 = vmatprep.subr.mxu1 %v3274_v21 }
 0x615   :  { %1195 = vmatpush1.msra.mxu1 %v3277_v22 }
 0x616   :  { %1196 = vmatprep.subr.mxu1 %v3280_v23 }
 0x617   :  { %1197 = vmatpush1.msra.mxu1 %v3283_v24 }
 0x618   :  { %1198 = vmatprep.subr.mxu1 %v3286_v25 }
 0x619   :  { %1199 = vmatpush1.msra.mxu1 %v3289_v26 }
 0x61a   :  { %2734 = vmatmul.mubr.msk.f32.vlgmr.msra.gmra.mxu1 %vm260_vm2, %v994_v37  ;;  %1394 = vmatprep.subr.mxu1 %v3326_v52 }
 0x61b   :  { %1395 = vmatpush1.msra.mxu1 %v3328_v53  ;;  %1442 = vmatprep.mubr.f32.mxu1 %v4102_v46 }
 0x61c   :  { %1396 = vmatprep.subr.mxu1 %v3330_v54 }
 0x61d   :  { %1397 = vmatpush1.msra.mxu1 %v3333_v55 }
 0x61e   :  { %1398 = vmatprep.subr.mxu1 %v3337_v56 }
 0x61f   :  { %1399 = vmatpush1.msra.mxu1 %v3341_v57 }
 0x620   :  { %1400 = vmatprep.subr.mxu1 %v3345_v58 }
 0x621   :  { %1401 = vmatpush1.msra.mxu1 %v3349_v59 }
 0x622   :  { %1402 = vmatprep.subr.mxu1 %v3353_v60 }
 0x623   :  { %1403 = vmatpush1.msra.mxu1 %v3357_v61 }
 0x624   :  { %1404 = vmatprep.subr.mxu1 %v4111_v10 }
 0x625   :  { %1405 = vmatpush1.msra.mxu1 %v4112_v11 }
 0x626   :  { %1406 = vmatprep.subr.mxu1 %v4113_v12 }
 0x627   :  { %1407 = vmatpush1.msra.mxu1 %v4114_v13 }
 0x628   :  { %1408 = vmatprep.subr.mxu1 %v4115_v14 }
 0x629   :  { %1409 = vmatpush1.msra.mxu1 %v4116_v16 }
 0x62a   :  { %1568 = vmatprep.subr.mxu1 %v4117_v17 }
 0x6b6   :  { %v882_v18 = vpop.f32.mrf.mxu1 }
 0x6b7   :  { %v883_v21 = vadd.f32 %v882_v18, %v4118_v20 }
 0x6b8   :  { %v884_v19 = vpop.f32.mrf.mxu1 }
 0x6b9   :  { %v885_v2 = vadd.f32 %v884_v19, %v3492_v48 }
 0x6ca   :  { %v1063_v22 = vpop.f32.mrf.mxu1 }
 0x6cb   :  { %v1068_v51 = vadd.f32 %v1063_v22, %v883_v21 }
 0x6cc   :  { %v1065_v49 = vpop.f32.mrf.mxu1 }
 0x6cd   :  { %v2731_v39 = vmul.f32 -1.442695, %v1068_v51  ;;  %v1069_v5 = vadd.f32 %v1065_v49, %v885_v2 }
 0x6cf   :  { %2870 = vpow2.f32 %v2731_v39  ;;  %v2732_v49 = vmul.f32 -1.442695, %v1069_v5 }
 0x6d0   :  { %2872 = vtanh.f32 %v1069_v5 }
 0x6da   :  { %v1234_v4 = vpop.f32.mrf.mxu1 }
 0x6db   :  { %v1241_v63 = vrot.slane %v1234_v4, 2 }
 0x6dc   :  { %v2871_v1 = vpop.eup %2870  ;;  %v1236_v32 = vpop.f32.mrf.mxu1 }
 0x6dd   :  { %v1073_v28 = vadd.f32 1.0, %v2871_v1  ;;  %v1245_v50 = vadd.f32 %v1241_v63, %v3313_v40  ;;  %v1242_v3 = vrot.slane %v1236_v32, 2  ;;  %v2873_v47 = vpop.eup %2872  ;;  %v1261_v40 = vrot.slane %v3574_v29, 6 }
 0x6df   :  { %2874 = vrcp.f32 %v1073_v28  ;;  %v2735_v43 = vmul.f32 -1.442695, %v1245_v50  ;;  %v1246_v62 = vadd.f32 %v1242_v3, %v3316_v45 }
 0x6e1   :  { %2876 = vpow2.f32 %v2735_v43  ;;  %v2736_v4 = vmul.f32 -1.442695, %v1246_v62 }
 0x6e2   :  { %2878 = vtanh.f32 %v1246_v62 }
 0x6ec   :  { %v2875_v44 = vpop.eup %2874 }
 0x6ed   :  { %v1084_v37 = vmul.f32 %v2875_v44, %v2873_v47  ;;  %v1083_v63 = vmul.f32 %v2875_v44, %v3570_v0 }
 0x6ee   :  { %v2877_v18 = vpop.eup %2876 }
 0x6ef   :  { %1086 = vrot.lane.b32.xlu0 %v1084_v37, %s3145_s3  ;;  %v1250_v19 = vadd.f32 1.0, %v2877_v18  ;;  %v2879_v21 = vpop.eup %2878 }
 0x6f1   :  { %2880 = vrcp.f32 %v1250_v19  ;;  %v3665_v19 = vld [vmem:[#allocation2 + $0x78] sm:$0xff] }
 0x6f2   :  { %2882 = vpow2.f32 %v2732_v49  ;;  %v3682_v49 = vld [vmem:[#allocation2 + $0x50] sm:$0xff] }
 0x6f3   :  { %2884 = vpow2.f32 %v2736_v4  ;;  %v3688_v4 = vld [vmem:[#allocation2 + $0x40] sm:$0xff] }
 0x6fe   :  { %v2881_v22 = vpop.eup %2880 }
 0x6ff   :  { %v1264_v51 = vmul.f32 %v2881_v22, %v2879_v21  ;;  %v1263_v39 = vmul.f32 %v2881_v22, %v1261_v40  ;;  %v2883_v2 = vpop.eup %2882  ;;  %v3669_v40 = vld [vmem:[#allocation2 + $0x70] sm:$0xff]  ;;  %v3673_v22 = vld [vmem:[#allocation2 + $0x68] sm:$0xff] }
 0x700   :  { %v1080_v45 = vadd.f32 1.0, %v2883_v2  ;;  %v2885_v29 = vpop.eup %2884  ;;  %v3685_v2 = vld [vmem:[#allocation2 + $0x48] sm:$0xff] }
 0x701   :  { %1266 = vrot.lane.b32.xlu1 %v1264_v51, %s3145_s3  ;;  %v1257_v32 = vadd.f32 1.0, %v2885_v29  ;;  %v3676_v51 = vld [vmem:[#allocation2 + $0x60] sm:$0xff] }
 0x702   :  { %2886 = vrcp.f32 %v1080_v45  ;;  %v3691_v45 = vld [vmem:[#allocation2 + $0x38] sm:$0xff]  ;;  %v3700_v29 = vld [vmem:[#allocation2 + $0x20] sm:$0xff] }
 0x70f   :  { %v2887_v50 = vpop.eup %2886 }
 0x761   :  { %v1087_v1 = vpop.permute.xlu0 %1086 }
 0x762   :  { %v3640_v28 = vadd.f32 %v1087_v1, %v1083_v63  ;;  %v3694_v63 = vld [vmem:[#allocation2 + $0x30] sm:$0xff]  ;;  %v3697_v1 = vld [vmem:[#allocation2 + $0x28] sm:$0xff] }
 0x764   :  { %2888 = vtanh.f32 %v3640_v28 }
 0x765   :  { %2890 = vrcp.f32 %v1257_v32 }
 0x771   :  { %v2889_v43 = vpop.eup %2888 }
 0x772   :  { %v1091_v3 = vmul.f32 %v2889_v43, %v2887_v50  ;;  %v2891_v0 = vpop.eup %2890 }
 0x773   :  { %v1267_v47 = vpop.permute.xlu1 %1266 }
 0x774   :  { %1093 = vrot.lane.b32.xlu0 %v1091_v3, %s3145_s3  ;;  %v3644_v5 = vadd.f32 %v1267_v47, %v1263_v39  ;;  %v3679_v39 = vld [vmem:[#allocation2 + $0x58] sm:$0xff] }
 0x776   :  { %2892 = vtanh.f32 %v3644_v5  ;;  %v1536_v3 = vrot.slane %v3644_v5, 6 }
 0x783   :  { %v2893_v44 = vpop.eup %2892 }
 0x784   :  { %v1271_v62 = vmul.f32 %v2893_v44, %v2891_v0 }
 0x786   :  { %v1273_v37 = vrot.slane %v1271_v62, 6 }
 0x788   :  { %1274 = vrot.lane.b32.xlu1 %v1273_v37, %s3145_s3 }
 0x7e6   :  { %v1094_v18 = vpop.permute.xlu0 %1093 }
 0x7e7   :  { %2733 = vmatmul.mubr.msk.f32.vlgmr.msra.gmra.mxu0 %vm260_vm2, %v1094_v18 }
 0x7e8   :  { %1295 = vmatpush1.msra.mxu0 %v3389_v6  ;;  %1342 = vmatprep.mubr.f32.mxu0 %v4102_v46 }
 0x7e9   :  { %1296 = vmatprep.subr.mxu0 %v3393_v7 }
 0x7ea   :  { %1297 = vmatpush1.msra.mxu0 %v3398_v8 }
 0x7eb   :  { %1298 = vmatprep.subr.mxu0 %v3401_v9 }
 0x7ec   :  { %1299 = vmatpush1.msra.mxu0 %v3405_v15 }
 0x7ed   :  { %1300 = vmatprep.subr.mxu0 %v3409_v27 }
 0x7ee   :  { %1301 = vmatpush1.msra.mxu0 %v3412_v30 }
 0x7ef   :  { %1302 = vmatprep.subr.mxu0 %v3415_v31 }
 0x7f0   :  { %1303 = vmatpush1.msra.mxu0 %v3418_v33 }
 0x7f1   :  { %1304 = vmatprep.subr.mxu0 %v3421_v34 }
 0x7f2   :  { %1305 = vmatpush1.msra.mxu0 %v3424_v35 }
 0x7f3   :  { %1306 = vmatprep.subr.mxu0 %v3427_v36 }
 0x7f4   :  { %1307 = vmatpush1.msra.mxu0 %v3430_v38 }
 0x7f5   :  { %1308 = vmatprep.subr.mxu0 %v3433_v41 }
 0x7f6   :  { %1309 = vmatpush1.msra.mxu0 %v3436_v42 }
 0x7f7   :  { %1465 = vmatprep.subr.mxu0 %v3665_v19 }
 0x7fa   :  { %v1275_v21 = vpop.permute.xlu1 %1274 }
 0x7fb   :  { %2737 = vmatmul.mubr.msk.f32.vlgmr.msra.gmra.mxu0 %vm260_vm2, %v1275_v21 }
 0x7fc   :  { %1466 = vmatpush1.msra.mxu0 %v3669_v40  ;;  %1513 = vmatprep.mubr.f32.mxu0 %v4102_v46 }
 0x7fd   :  { %1467 = vmatprep.subr.mxu0 %v3673_v22 }
 0x7fe   :  { %1468 = vmatpush1.msra.mxu0 %v3676_v51 }
 0x7ff   :  { %1469 = vmatprep.subr.mxu0 %v3679_v39 }
 0x800   :  { %1470 = vmatpush1.msra.mxu0 %v3682_v49 }
 0x801   :  { %1471 = vmatprep.subr.mxu0 %v3685_v2 }
 0x802   :  { %1472 = vmatpush1.msra.mxu0 %v3688_v4 }
 0x803   :  { %1473 = vmatprep.subr.mxu0 %v3691_v45 }
 0x804   :  { %1474 = vmatpush1.msra.mxu0 %v3694_v63 }
 0x805   :  { %1475 = vmatprep.subr.mxu0 %v3697_v1 }
 0x806   :  { %1476 = vmatpush1.msra.mxu0 %v3700_v29 }
 0x807   :  { %1477 = vmatprep.subr.mxu0 %v3280_v23 }
 0x808   :  { %1478 = vmatpush1.msra.mxu0 %v3283_v24 }
 0x809   :  { %1479 = vmatprep.subr.mxu0 %v3286_v25 }
 0x80a   :  { %1480 = vmatpush1.msra.mxu0 %v3289_v26 }
 0x80b   :  { %2741 = vmatmul.mubr.msk.f32.vlgmr.msra.gmra.mxu0 %vm260_vm2, %v1275_v21  ;;  %1668 = vmatprep.subr.mxu0 %v3326_v52 }
 0x80c   :  { %1669 = vmatpush1.msra.mxu0 %v3328_v53  ;;  %1716 = vmatprep.mubr.f32.mxu0 %v4102_v46 }
 0x80d   :  { %1670 = vmatprep.subr.mxu0 %v3330_v54 }
 0x80e   :  { %1671 = vmatpush1.msra.mxu0 %v3333_v55 }
 0x80f   :  { %1672 = vmatprep.subr.mxu0 %v3337_v56 }
 0x810   :  { %1673 = vmatpush1.msra.mxu0 %v3341_v57 }
 0x811   :  { %1674 = vmatprep.subr.mxu0 %v3345_v58  ;;  %v4119_v58 = vld [vmem:[#allocation15_spill] sm:$0xff] }
 0x812   :  { %1675 = vmatpush1.msra.mxu0 %v3349_v59 }
 0x813   :  { %1676 = vmatprep.subr.mxu0 %v3353_v60 }
 0x814   :  { %1677 = vmatpush1.msra.mxu0 %v3357_v61 }
 0x815   :  { %1678 = vmatprep.subr.mxu0 %v4111_v10 }
 0x816   :  { %1679 = vmatpush1.msra.mxu0 %v4112_v11 }
 0x817   :  { %1680 = vmatprep.subr.mxu0 %v4113_v12 }
 0x818   :  { %1681 = vmatpush1.msra.mxu0 %v4114_v13  ;;  %v4120_v13 = vld [vmem:[#allocation16_spill] sm:$0xff] }
 0x819   :  { %1682 = vmatprep.subr.mxu0 %v4115_v14 }
 0x81a   :  { %1683 = vmatpush1.msra.mxu0 %v4116_v16 }
 0x81b   :  { %1849 = vmatprep.subr.mxu0 %v4117_v17 }
 0x8a7   :  { %v1163_v23 = vpop.f32.mrf.mxu0 }
 0x8a8   :  { %v1164_v25 = vadd.f32 %v1163_v23, %v4118_v20 }
 0x8a9   :  { %v1165_v24 = vpop.f32.mrf.mxu0 }
 0x8aa   :  { %v1166_v55 = vadd.f32 %v1165_v24, %v3492_v48 }
 0x8bb   :  { %v1344_v26 = vpop.f32.mrf.mxu0 }
 0x8bc   :  { %v1349_v52 = vadd.f32 %v1344_v26, %v1164_v25 }
 0x8bd   :  { %v1346_v54 = vpop.f32.mrf.mxu0 }
 0x8be   :  { %v2738_v53 = vmul.f32 -1.442695, %v1349_v52  ;;  %v1350_v56 = vadd.f32 %v1346_v54, %v1166_v55 }
 0x8c0   :  { %2894 = vpow2.f32 %v2738_v53  ;;  %v2739_v62 = vmul.f32 -1.442695, %v1350_v56 }
 0x8c1   :  { %2896 = vtanh.f32 %v1350_v56 }
 0x8cb   :  { %v1515_v57 = vpop.f32.mrf.mxu0 }
 0x8cc   :  { %v1520_v59 = vadd.f32 %v1515_v57, %v4119_v58 }
 0x8cd   :  { %v2895_v60 = vpop.eup %2894  ;;  %v1517_v11 = vpop.f32.mrf.mxu0 }
 0x8ce   :  { %v1354_v61 = vadd.f32 1.0, %v2895_v60  ;;  %v2742_v10 = vmul.f32 -1.442695, %v1520_v59  ;;  %v2897_v12 = vpop.eup %2896  ;;  %v1521_v14 = vadd.f32 %v1517_v11, %v4120_v13  ;;  %v3823_v11 = vld [vmem:[#allocation6 + $0x18] sm:$0xff] }
 0x8d0   :  { %2898 = vrcp.f32 %v1354_v61  ;;  %v2743_v18 = vmul.f32 -1.442695, %v1521_v14  ;;  %v3817_v61 = vld [vmem:[#allocation6 + $0x28] sm:$0xff] }
 0x8d1   :  { %2900 = vpow2.f32 %v2742_v10  ;;  %v3820_v10 = vld [vmem:[#allocation6 + $0x20] sm:$0xff] }
 0x8d2   :  { %2902 = vtanh.f32 %v1521_v14  ;;  %v3829_v14 = vld [vmem:[#allocation6 + $0x8] sm:$0xff] }
 0x8dd   :  { %v2899_v16 = vpop.eup %2898 }
 0x8de   :  { %v2901_v17 = vpop.eup %2900  ;;  %v1365_v50 = vmul.f32 %v2899_v16, %v2897_v12  ;;  %v1364_v23 = vmul.f32 %v2899_v16, %v3640_v28  ;;  %v3826_v12 = vld [vmem:[#allocation6 + $0x10] sm:$0xff]  ;;  %v3832_v16 = vld [vmem:[#allocation6] sm:$0xff] }
 0x8df   :  { %v1525_v43 = vadd.f32 1.0, %v2901_v17  ;;  %v2903_v32 = vpop.eup %2902  ;;  %v3835_v17 = vld [vmem:[#allocation4 + $0x78] sm:$0xff] }
 0x8e0   :  { %1367 = vrot.lane.b32.xlu0 %v1365_v50, %s3145_s3 }
 0x8e1   :  { %2904 = vrcp.f32 %v1525_v43 }
 0x8e2   :  { %2906 = vpow2.f32 %v2739_v62 }
 0x8e3   :  { %2908 = vpow2.f32 %v2743_v18 }
 0x8ee   :  { %v2905_v47 = vpop.eup %2904 }
 0x8ef   :  { %v1539_v0 = vmul.f32 %v2905_v47, %v2903_v32  ;;  %v1538_v44 = vmul.f32 %v2905_v47, %v1536_v3  ;;  %v2907_v37 = vpop.eup %2906 }
 0x8f0   :  { %v1361_v21 = vadd.f32 1.0, %v2907_v37  ;;  %v2909_v5 = vpop.eup %2908 }
 0x8f1   :  { %1541 = vrot.lane.b32.xlu1 %v1539_v0, %s3145_s3  ;;  %v1532_v52 = vadd.f32 1.0, %v2909_v5 }
 0x8f2   :  { %2910 = vrcp.f32 %v1361_v21 }
 0x8ff   :  { %v2911_v26 = vpop.eup %2910 }
 0x952   :  { %v1368_v24 = vpop.permute.xlu0 %1367 }
 0x953   :  { %v3734_v25 = vadd.f32 %v1368_v24, %v1364_v23 }
 0x955   :  { %2912 = vtanh.f32 %v3734_v25 }
 0x956   :  { %2914 = vrcp.f32 %v1532_v52 }
 0x962   :  { %v2913_v53 = vpop.eup %2912 }
 0x963   :  { %v1542_v54 = vpop.permute.xlu1 %1541  ;;  %v1372_v55 = vmul.f32 %v2913_v53, %v2911_v26  ;;  %v2915_v28 = vpop.eup %2914 }
 0x964   :  { %v3737_v56 = vadd.f32 %v1542_v54, %v1538_v44 }
 0x965   :  { %1374 = vrot.lane.b32.xlu0 %v1372_v55, %s3145_s3 }
 0x966   :  { %2916 = vtanh.f32 %v3737_v56 }
 0x973   :  { %v2917_v57 = vpop.eup %2916 }
 0x974   :  { %v1546_v59 = vmul.f32 %v2917_v57, %v2915_v28 }
 0x976   :  { %1548 = vrot.lane.b32.xlu1 %v1546_v59, %s3145_s3 }
 0x9d7   :  { %v1375_v60 = vpop.permute.xlu0 %1374 }
 0x9d8   :  { %2740 = vmatmul.mubr.msk.f32.vlgmr.msra.gmra.mxu1 %vm260_vm2, %v1375_v60 }
 0x9d9   :  { %1569 = vmatpush1.msra.mxu1 %v3389_v6  ;;  %1616 = vmatprep.mubr.f32.mxu1 %v4102_v46 }
 0x9da   :  { %1570 = vmatprep.subr.mxu1 %v3393_v7  ;;  %v3773_v7 = vld [vmem:[#allocation2 + $0x18] sm:$0xff] }
 0x9db   :  { %1571 = vmatpush1.msra.mxu1 %v3398_v8  ;;  %v3776_v8 = vld [vmem:[#allocation2 + $0x10] sm:$0xff] }
 0x9dc   :  { %1572 = vmatprep.subr.mxu1 %v3401_v9  ;;  %v3779_v9 = vld [vmem:[#allocation2 + $0x8] sm:$0xff] }
 0x9dd   :  { %1573 = vmatpush1.msra.mxu1 %v3405_v15  ;;  %v3782_v15 = vld [vmem:[#allocation2] sm:$0xff] }
 0x9de   :  { %1574 = vmatprep.subr.mxu1 %v3409_v27  ;;  %v3786_v27 = vld [vmem:[#allocation6 + $0x78] sm:$0xff] }
 0x9df   :  { %1575 = vmatpush1.msra.mxu1 %v3412_v30  ;;  %v3789_v30 = vld [vmem:[#allocation6 + $0x70] sm:$0xff] }
 0x9e0   :  { %1576 = vmatprep.subr.mxu1 %v3415_v31  ;;  %v3793_v31 = vld [vmem:[#allocation6 + $0x68] sm:$0xff] }
 0x9e1   :  { %1577 = vmatpush1.msra.mxu1 %v3418_v33  ;;  %v3796_v33 = vld [vmem:[#allocation6 + $0x60] sm:$0xff] }
 0x9e2   :  { %1578 = vmatprep.subr.mxu1 %v3421_v34  ;;  %v3799_v34 = vld [vmem:[#allocation6 + $0x58] sm:$0xff] }
 0x9e3   :  { %1579 = vmatpush1.msra.mxu1 %v3424_v35  ;;  %v3802_v35 = vld [vmem:[#allocation6 + $0x50] sm:$0xff] }
 0x9e4   :  { %1580 = vmatprep.subr.mxu1 %v3427_v36  ;;  %v3805_v36 = vld [vmem:[#allocation6 + $0x48] sm:$0xff] }
 0x9e5   :  { %1581 = vmatpush1.msra.mxu1 %v3430_v38  ;;  %v3808_v38 = vld [vmem:[#allocation6 + $0x40] sm:$0xff] }
 0x9e6   :  { %1582 = vmatprep.subr.mxu1 %v3433_v41  ;;  %v3811_v41 = vld [vmem:[#allocation6 + $0x38] sm:$0xff] }
 0x9e7   :  { %1583 = vmatpush1.msra.mxu1 %v3436_v42  ;;  %v3814_v42 = vld [vmem:[#allocation6 + $0x30] sm:$0xff] }
 0x9e8   :  { %v1549_v6 = vpop.permute.xlu1 %1548  ;;  %1739 = vmatprep.subr.mxu1 %v3665_v19 }
 0x9e9   :  { %2744 = vmatmul.mubr.msk.f32.vlgmr.msra.gmra.mxu1 %vm260_vm2, %v1549_v6 }
 0x9ea   :  { %1740 = vmatpush1.msra.mxu1 %v3669_v40  ;;  %1787 = vmatprep.mubr.f32.mxu1 %v4102_v46 }
 0x9eb   :  { %1741 = vmatprep.subr.mxu1 %v3673_v22 }
 0x9ec   :  { %1742 = vmatpush1.msra.mxu1 %v3676_v51 }
 0x9ed   :  { %1743 = vmatprep.subr.mxu1 %v3679_v39 }
 0x9ee   :  { %1744 = vmatpush1.msra.mxu1 %v3682_v49 }
 0x9ef   :  { %1745 = vmatprep.subr.mxu1 %v3685_v2 }
 0x9f0   :  { %1746 = vmatpush1.msra.mxu1 %v3688_v4 }
 0x9f1   :  { %1747 = vmatprep.subr.mxu1 %v3691_v45 }
 0x9f2   :  { %1748 = vmatpush1.msra.mxu1 %v3694_v63 }
 0x9f3   :  { %1749 = vmatprep.subr.mxu1 %v3697_v1 }
 0x9f4   :  { %1750 = vmatpush1.msra.mxu1 %v3700_v29 }
 0x9f5   :  { %1751 = vmatprep.subr.mxu1 %v3773_v7 }
 0x9f6   :  { %1752 = vmatpush1.msra.mxu1 %v3776_v8 }
 0x9f7   :  { %1753 = vmatprep.subr.mxu1 %v3779_v9 }
 0x9f8   :  { %1754 = vmatpush1.msra.mxu1 %v3782_v15 }
 0x9f9   :  { %2748 = vmatmul.mubr.msk.f32.vlgmr.msra.gmra.mxu1 %vm260_vm2, %v1549_v6  ;;  %1949 = vmatprep.subr.mxu1 %v3786_v27 }
 0x9fa   :  { %1950 = vmatpush1.msra.mxu1 %v3789_v30  ;;  %1997 = vmatprep.mubr.f32.mxu1 %v4102_v46 }
 0x9fb   :  { %1951 = vmatprep.subr.mxu1 %v3793_v31 }
 0x9fc   :  { %1952 = vmatpush1.msra.mxu1 %v3796_v33 }
 0x9fd   :  { %1953 = vmatprep.subr.mxu1 %v3799_v34 }
 0x9fe   :  { %1954 = vmatpush1.msra.mxu1 %v3802_v35 }
 0x9ff   :  { %1955 = vmatprep.subr.mxu1 %v3805_v36 }
 0xa00   :  { %1956 = vmatpush1.msra.mxu1 %v3808_v38 }
 0xa01   :  { %1957 = vmatprep.subr.mxu1 %v3811_v41 }
 0xa02   :  { %1958 = vmatpush1.msra.mxu1 %v3814_v42 }
 0xa03   :  { %1959 = vmatprep.subr.mxu1 %v3817_v61 }
 0xa04   :  { %1960 = vmatpush1.msra.mxu1 %v3820_v10 }
 0xa05   :  { %1961 = vmatprep.subr.mxu1 %v3823_v11 }
 0xa06   :  { %1962 = vmatpush1.msra.mxu1 %v3826_v12 }
 0xa07   :  { %1963 = vmatprep.subr.mxu1 %v3829_v14 }
 0xa08   :  { %1964 = vmatpush1.msra.mxu1 %v3832_v16 }
 0xa09   :  { %2130 = vmatprep.subr.mxu1 %v3835_v17 }
 0xa98   :  { %v1444_v50 = vpop.f32.mrf.mxu1 }
 0xa99   :  { %v1445_v32 = vadd.f32 %v1444_v50, %v4118_v20  ;;  %v1816_v50 = vrot.slane %v3737_v56, 6 }
 0xa9a   :  { %v1446_v43 = vpop.f32.mrf.mxu1 }
 0xa9b   :  { %v1447_v62 = vadd.f32 %v1446_v43, %v3492_v48 }
 0xaa9   :  { %v1618_v3 = vpop.f32.mrf.mxu1 }
 0xaaa   :  { %v1623_v47 = vadd.f32 %v1618_v3, %v1445_v32 }
 0xaab   :  { %v1620_v44 = vpop.f32.mrf.mxu1 }
 0xaac   :  { %v2745_v0 = vmul.f32 -1.442695, %v1623_v47  ;;  %v1624_v37 = vadd.f32 %v1620_v44, %v1447_v62 }
 0xaae   :  { %2918 = vpow2.f32 %v2745_v0  ;;  %v2746_v47 = vmul.f32 -1.442695, %v1624_v37 }
 0xaaf   :  { %2920 = vtanh.f32 %v1624_v37 }
 0xab9   :  { %v1789_v18 = vpop.f32.mrf.mxu1 }
 0xaba   :  { %v1796_v21 = vrot.slane %v1789_v18, 6 }
 0xabb   :  { %v2919_v23 = vpop.eup %2918  ;;  %v1791_v52 = vpop.f32.mrf.mxu1 }
 0xabc   :  { %v1628_v24 = vadd.f32 1.0, %v2919_v23  ;;  %v1800_v5 = vadd.f32 %v1796_v21, %v4119_v58  ;;  %v1797_v53 = vrot.slane %v1791_v52, 6  ;;  %v2921_v54 = vpop.eup %2920 }
 0xabe   :  { %2922 = vrcp.f32 %v1628_v24  ;;  %v2749_v26 = vmul.f32 -1.442695, %v1800_v5  ;;  %v1801_v28 = vadd.f32 %v1797_v53, %v4120_v13 }
 0xac0   :  { %2924 = vpow2.f32 %v2749_v26  ;;  %v2750_v44 = vmul.f32 -1.442695, %v1801_v28 }
 0xac1   :  { %2926 = vtanh.f32 %v1801_v28 }
 0xacb   :  { %v2923_v55 = vpop.eup %2922 }
 0xacc   :  { %v1639_v57 = vmul.f32 %v2923_v55, %v2921_v54  ;;  %v1638_v18 = vmul.f32 %v2923_v55, %v3734_v25 }
 0xacd   :  { %v2925_v59 = vpop.eup %2924 }
 0xace   :  { %1641 = vrot.lane.b32.xlu0 %v1639_v57, %s3145_s3  ;;  %v1805_v60 = vadd.f32 1.0, %v2925_v59  ;;  %v2927_v6 = vpop.eup %2926  ;;  %v3855_v59 = vld [vmem:[#allocation4 + $0x70] sm:$0xff] }
 0xad0   :  { %2928 = vrcp.f32 %v1805_v60  ;;  %v3859_v60 = vld [vmem:[#allocation4 + $0x68] sm:$0xff] }
 0xad1   :  { %2930 = vpow2.f32 %v2746_v47  ;;  %v3877_v47 = vld [vmem:[#allocation4 + $0x38] sm:$0xff] }
 0xad2   :  { %2932 = vpow2.f32 %v2750_v44  ;;  %v3883_v44 = vld [vmem:[#allocation4 + $0x28] sm:$0xff] }
 0xadd   :  { %v2929_v43 = vpop.eup %2928 }
 0xade   :  { %v1819_v32 = vmul.f32 %v2929_v43, %v2927_v6  ;;  %v1818_v3 = vmul.f32 %v2929_v43, %v1816_v50  ;;  %v2931_v0 = vpop.eup %2930  ;;  %v3862_v6 = vld [vmem:[#allocation4 + $0x60] sm:$0xff]  ;;  %v3865_v50 = vld [vmem:[#allocation4 + $0x58] sm:$0xff]  ;;  %v3868_v43 = vld [vmem:[#allocation4 + $0x50] sm:$0xff] }
 0xadf   :  { %v1635_v62 = vadd.f32 1.0, %v2931_v0  ;;  %v2933_v56 = vpop.eup %2932  ;;  %v3880_v0 = vld [vmem:[#allocation4 + $0x30] sm:$0xff] }
 0xae0   :  { %1821 = vrot.lane.b32.xlu1 %v1819_v32, %s3145_s3  ;;  %v1812_v26 = vadd.f32 1.0, %v2933_v56  ;;  %v3871_v32 = vld [vmem:[#allocation4 + $0x48] sm:$0xff] }
 0xae1   :  { %2934 = vrcp.f32 %v1635_v62  ;;  %v3886_v62 = vld [vmem:[#allocation4 + $0x20] sm:$0xff]  ;;  %v3895_v56 = vld [vmem:[#allocation4 + $0x8] sm:$0xff] }
 0xaee   :  { %v2935_v24 = vpop.eup %2934 }
 0xb40   :  { %v1642_v21 = vpop.permute.xlu0 %1641 }
 0xb41   :  { %v3846_v23 = vadd.f32 %v1642_v21, %v1638_v18  ;;  %v3889_v18 = vld [vmem:[#allocation4 + $0x18] sm:$0xff]  ;;  %v3892_v21 = vld [vmem:[#allocation4 + $0x10] sm:$0xff] }
 0xb43   :  { %2936 = vtanh.f32 %v3846_v23 }
 0xb44   :  { %2938 = vrcp.f32 %v1812_v26 }
 0xb50   :  { %v2937_v5 = vpop.eup %2936 }
 0xb51   :  { %v1646_v52 = vmul.f32 %v2937_v5, %v2935_v24  ;;  %v2939_v25 = vpop.eup %2938  ;;  %v3898_v24 = vld [vmem:[#allocation4] sm:$0xff] }
 0xb52   :  { %v1822_v53 = vpop.permute.xlu1 %1821 }
 0xb53   :  { %1648 = vrot.lane.b32.xlu0 %v1646_v52, %s3145_s3  ;;  %v3850_v37 = vadd.f32 %v1822_v53, %v1818_v3  ;;  %v3874_v3 = vld [vmem:[#allocation4 + $0x40] sm:$0xff] }
 0xb55   :  { %2940 = vtanh.f32 %v3850_v37 }
 0xb62   :  { %v2941_v54 = vpop.eup %2940 }
 0xb63   :  { %v1826_v55 = vmul.f32 %v2941_v54, %v2939_v25 }
 0xb65   :  { %v1828_v28 = vrot.slane %v1826_v55, 2 }
 0xb67   :  { %1829 = vrot.lane.b32.xlu1 %v1828_v28, %s3145_s3 }
 0xbc5   :  { %v1649_v57 = vpop.permute.xlu0 %1648 }
 0xbc6   :  { %2747 = vmatmul.mubr.msk.f32.vlgmr.msra.gmra.mxu0 %vm260_vm2, %v1649_v57  ;;  %v2097_v57 = vrot.slane %v3850_v37, 6 }
 0xbc7   :  { %1850 = vmatpush1.msra.mxu0 %v3855_v59  ;;  %1897 = vmatprep.mubr.f32.mxu0 %v4102_v46 }
 0xbc8   :  { %1851 = vmatprep.subr.mxu0 %v3859_v60 }
 0xbc9   :  { %1852 = vmatpush1.msra.mxu0 %v3862_v6 }
 0xbca   :  { %1853 = vmatprep.subr.mxu0 %v3865_v50 }
 0xbcb   :  { %1854 = vmatpush1.msra.mxu0 %v3868_v43 }
 0xbcc   :  { %1855 = vmatprep.subr.mxu0 %v3871_v32 }
 0xbcd   :  { %1856 = vmatpush1.msra.mxu0 %v3874_v3 }
 0xbce   :  { %1857 = vmatprep.subr.mxu0 %v3877_v47 }
 0xbcf   :  { %1858 = vmatpush1.msra.mxu0 %v3880_v0 }
 0xbd0   :  { %1859 = vmatprep.subr.mxu0 %v3883_v44 }
 0xbd1   :  { %1860 = vmatpush1.msra.mxu0 %v3886_v62 }
 0xbd2   :  { %1861 = vmatprep.subr.mxu0 %v3889_v18 }
 0xbd3   :  { %1862 = vmatpush1.msra.mxu0 %v3892_v21 }
 0xbd4   :  { %1863 = vmatprep.subr.mxu0 %v3895_v56 }
 0xbd5   :  { %1864 = vmatpush1.msra.mxu0 %v3898_v24 }
 0xbd6   :  { %2020 = vmatprep.subr.mxu0 %v3665_v19 }
 0xbd9   :  { %v1830_v5 = vpop.permute.xlu1 %1829 }
 0xbda   :  { %2751 = vmatmul.mubr.msk.f32.vlgmr.msra.gmra.mxu0 %vm260_vm2, %v1830_v5 }
 0xbdb   :  { %2021 = vmatpush1.msra.mxu0 %v3669_v40  ;;  %2068 = vmatprep.mubr.f32.mxu0 %v4102_v46 }
 0xbdc   :  { %2022 = vmatprep.subr.mxu0 %v3673_v22 }
 0xbdd   :  { %2023 = vmatpush1.msra.mxu0 %v3676_v51 }
 0xbde   :  { %2024 = vmatprep.subr.mxu0 %v3679_v39 }
 0xbdf   :  { %2025 = vmatpush1.msra.mxu0 %v3682_v49 }
 0xbe0   :  { %2026 = vmatprep.subr.mxu0 %v3685_v2 }
 0xbe1   :  { %2027 = vmatpush1.msra.mxu0 %v3688_v4 }
 0xbe2   :  { %2028 = vmatprep.subr.mxu0 %v3691_v45 }
 0xbe3   :  { %2029 = vmatpush1.msra.mxu0 %v3694_v63 }
 0xbe4   :  { %2030 = vmatprep.subr.mxu0 %v3697_v1 }
 0xbe5   :  { %2031 = vmatpush1.msra.mxu0 %v3700_v29 }
 0xbe6   :  { %2032 = vmatprep.subr.mxu0 %v3773_v7 }
 0xbe7   :  { %2033 = vmatpush1.msra.mxu0 %v3776_v8 }
 0xbe8   :  { %2034 = vmatprep.subr.mxu0 %v3779_v9 }
 0xbe9   :  { %2035 = vmatpush1.msra.mxu0 %v3782_v15 }
 0xbea   :  { %2755 = vmatmul.mubr.msk.f32.vlgmr.msra.gmra.mxu0 %vm260_vm2, %v1830_v5  ;;  %2230 = vmatprep.subr.mxu0 %v3786_v27 }
 0xbeb   :  { %2231 = vmatpush1.msra.mxu0 %v3789_v30  ;;  %2278 = vmatprep.mubr.f32.mxu0 %v4102_v46 }
 0xbec   :  { %2232 = vmatprep.subr.mxu0 %v3793_v31 }
 0xbed   :  { %2233 = vmatpush1.msra.mxu0 %v3796_v33 }
 0xbee   :  { %2234 = vmatprep.subr.mxu0 %v3799_v34 }
 0xbef   :  { %2235 = vmatpush1.msra.mxu0 %v3802_v35 }
 0xbf0   :  { %2236 = vmatprep.subr.mxu0 %v3805_v36 }
 0xbf1   :  { %2237 = vmatpush1.msra.mxu0 %v3808_v38 }
 0xbf2   :  { %2238 = vmatprep.subr.mxu0 %v3811_v41 }
 0xbf3   :  { %2239 = vmatpush1.msra.mxu0 %v3814_v42 }
 0xbf4   :  { %2240 = vmatprep.subr.mxu0 %v3817_v61 }
 0xbf5   :  { %2241 = vmatpush1.msra.mxu0 %v3820_v10 }
 0xbf6   :  { %2242 = vmatprep.subr.mxu0 %v3823_v11 }
 0xbf7   :  { %2243 = vmatpush1.msra.mxu0 %v3826_v12 }
 0xbf8   :  { %2244 = vmatprep.subr.mxu0 %v3829_v14 }
 0xbf9   :  { %2245 = vmatpush1.msra.mxu0 %v3832_v16 }
 0xbfa   :  { %2411 = vmatprep.subr.mxu0 %v3835_v17 }
 0xc86   :  { %v1718_v27 = vpop.f32.mrf.mxu0 }
 0xc87   :  { %v1719_v31 = vadd.f32 %v1718_v27, %v4118_v20 }
 0xc88   :  { %v1720_v30 = vpop.f32.mrf.mxu0 }
 0xc89   :  { %v1721_v38 = vadd.f32 %v1720_v30, %v3492_v48 }
 0xc9a   :  { %v1899_v33 = vpop.f32.mrf.mxu0 }
 0xc9b   :  { %v1904_v34 = vadd.f32 %v1899_v33, %v1719_v31 }
 0xc9c   :  { %v1901_v36 = vpop.f32.mrf.mxu0 }
 0xc9d   :  { %v2752_v35 = vmul.f32 -1.442695, %v1904_v34  ;;  %v1905_v41 = vadd.f32 %v1901_v36, %v1721_v38 }
 0xc9f   :  { %2942 = vpow2.f32 %v2752_v35  ;;  %v2753_v31 = vmul.f32 -1.442695, %v1905_v41 }
 0xca0   :  { %2944 = vtanh.f32 %v1905_v41 }
 0xcaa   :  { %v2070_v42 = vpop.f32.mrf.mxu0 }
 0xcab   :  { %v2077_v61 = vrot.slane %v2070_v42, 4 }
 0xcac   :  { %v2943_v10 = vpop.eup %2942  ;;  %v2072_v16 = vpop.f32.mrf.mxu0 }
 0xcad   :  { %v1909_v11 = vadd.f32 1.0, %v2943_v10  ;;  %v2081_v12 = vadd.f32 %v2077_v61, %v4119_v58  ;;  %v2078_v17 = vrot.slane %v2072_v16, 4  ;;  %v2945_v26 = vpop.eup %2944 }
 0xcaf   :  { %2946 = vrcp.f32 %v1909_v11  ;;  %v2756_v14 = vmul.f32 -1.442695, %v2081_v12  ;;  %v2082_v53 = vadd.f32 %v2078_v17, %v4120_v13 }
 0xcb1   :  { %2948 = vpow2.f32 %v2756_v14  ;;  %v2757_v34 = vmul.f32 -1.442695, %v2082_v53 }
 0xcb2   :  { %2950 = vtanh.f32 %v2082_v53 }
 0xcbc   :  { %v2947_v52 = vpop.eup %2946 }
 0xcbd   :  { %v1920_v25 = vmul.f32 %v2947_v52, %v2945_v26  ;;  %v1919_v36 = vmul.f32 %v2947_v52, %v3846_v23 }
 0xcbe   :  { %v2949_v54 = vpop.eup %2948 }
 0xcbf   :  { %1922 = vrot.lane.b32.xlu0 %v1920_v25, %s3145_s3  ;;  %v2086_v55 = vadd.f32 1.0, %v2949_v54  ;;  %v2951_v28 = vpop.eup %2950 }
 0xcc1   :  { %2952 = vrcp.f32 %v2086_v55 }
 0xcc2   :  { %2954 = vpow2.f32 %v2753_v31 }
 0xcc3   :  { %2956 = vpow2.f32 %v2757_v34 }
 0xcce   :  { %v2953_v5 = vpop.eup %2952 }
 0xccf   :  { %v2100_v27 = vmul.f32 %v2953_v5, %v2951_v28  ;;  %v2099_v30 = vmul.f32 %v2953_v5, %v2097_v57  ;;  %v2955_v33 = vpop.eup %2954 }
 0xcd0   :  { %v1916_v35 = vadd.f32 1.0, %v2955_v33  ;;  %v2957_v37 = vpop.eup %2956 }
 0xcd1   :  { %2102 = vrot.lane.b32.xlu1 %v2100_v27, %s3145_s3  ;;  %v2093_v11 = vadd.f32 1.0, %v2957_v37 }
 0xcd2   :  { %2958 = vrcp.f32 %v1916_v35 }
 0xcdf   :  { %v2959_v61 = vpop.eup %2958 }
 0xd31   :  { %v1923_v38 = vpop.permute.xlu0 %1922 }
 0xd32   :  { %v3946_v42 = vadd.f32 %v1923_v38, %v1919_v36 }
 0xd34   :  { %2960 = vtanh.f32 %v3946_v42 }
 0xd35   :  { %2962 = vrcp.f32 %v2093_v11 }
 0xd41   :  { %v2961_v10 = vpop.eup %2960 }
 0xd42   :  { %v1927_v12 = vmul.f32 %v2961_v10, %v2959_v61  ;;  %v2963_v23 = vpop.eup %2962 }
 0xd43   :  { %v2103_v14 = vpop.permute.xlu1 %2102 }
 0xd44   :  { %1929 = vrot.lane.b32.xlu0 %v1927_v12, %s3145_s3  ;;  %v3950_v41 = vadd.f32 %v2103_v14, %v2099_v30 }
 0xd46   :  { %2964 = vtanh.f32 %v3950_v41 }
 0xd53   :  { %v2965_v16 = vpop.eup %2964 }
 0xd54   :  { %v2107_v17 = vmul.f32 %v2965_v16, %v2963_v23 }
 0xd56   :  { %v2109_v26 = vrot.slane %v2107_v17, 4 }
 0xd58   :  { %2110 = vrot.lane.b32.xlu1 %v2109_v26, %s3145_s3 }
 0xdb6   :  { %v1930_v52 = vpop.permute.xlu0 %1929 }
 0xdb7   :  { %2754 = vmatmul.mubr.msk.f32.vlgmr.msra.gmra.mxu1 %vm260_vm2, %v1930_v52 }
 0xdb8   :  { %2131 = vmatpush1.msra.mxu1 %v3855_v59  ;;  %2178 = vmatprep.mubr.f32.mxu1 %v4102_v46 }
 0xdb9   :  { %2132 = vmatprep.subr.mxu1 %v3859_v60 }
 0xdba   :  { %2133 = vmatpush1.msra.mxu1 %v3862_v6 }
 0xdbb   :  { %2134 = vmatprep.subr.mxu1 %v3865_v50 }
 0xdbc   :  { %2135 = vmatpush1.msra.mxu1 %v3868_v43 }
 0xdbd   :  { %2136 = vmatprep.subr.mxu1 %v3871_v32 }
 0xdbe   :  { %2137 = vmatpush1.msra.mxu1 %v3874_v3 }
 0xdbf   :  { %2138 = vmatprep.subr.mxu1 %v3877_v47 }
 0xdc0   :  { %2139 = vmatpush1.msra.mxu1 %v3880_v0 }
 0xdc1   :  { %2140 = vmatprep.subr.mxu1 %v3883_v44 }
 0xdc2   :  { %2141 = vmatpush1.msra.mxu1 %v3886_v62 }
 0xdc3   :  { %2142 = vmatprep.subr.mxu1 %v3889_v18 }
 0xdc4   :  { %2143 = vmatpush1.msra.mxu1 %v3892_v21 }
 0xdc5   :  { %2144 = vmatprep.subr.mxu1 %v3895_v56 }
 0xdc6   :  { %2145 = vmatpush1.msra.mxu1 %v3898_v24 }
 0xdc7   :  { %2301 = vmatprep.subr.mxu1 %v3665_v19 }
 0xdca   :  { %v2111_v53 = vpop.permute.xlu1 %2110 }
 0xdcb   :  { %2758 = vmatmul.mubr.msk.f32.vlgmr.msra.gmra.mxu1 %vm260_vm2, %v2111_v53 }
 0xdcc   :  { %2302 = vmatpush1.msra.mxu1 %v3669_v40  ;;  %2349 = vmatprep.mubr.f32.mxu1 %v4102_v46 }
 0xdcd   :  { %2303 = vmatprep.subr.mxu1 %v3673_v22 }
 0xdce   :  { %2304 = vmatpush1.msra.mxu1 %v3676_v51 }
 0xdcf   :  { %2305 = vmatprep.subr.mxu1 %v3679_v39 }
 0xdd0   :  { %2306 = vmatpush1.msra.mxu1 %v3682_v49 }
 0xdd1   :  { %2307 = vmatprep.subr.mxu1 %v3685_v2 }
 0xdd2   :  { %2308 = vmatpush1.msra.mxu1 %v3688_v4 }
 0xdd3   :  { %2309 = vmatprep.subr.mxu1 %v3691_v45 }
 0xdd4   :  { %2310 = vmatpush1.msra.mxu1 %v3694_v63 }
 0xdd5   :  { %2311 = vmatprep.subr.mxu1 %v3697_v1 }
 0xdd6   :  { %2312 = vmatpush1.msra.mxu1 %v3700_v29 }
 0xdd7   :  { %2313 = vmatprep.subr.mxu1 %v3773_v7 }
 0xdd8   :  { %2314 = vmatpush1.msra.mxu1 %v3776_v8 }
 0xdd9   :  { %2315 = vmatprep.subr.mxu1 %v3779_v9 }
 0xdda   :  { %2316 = vmatpush1.msra.mxu1 %v3782_v15 }
 0xddb   :  { %2762 = vmatmul.mubr.msk.f32.vlgmr.msra.gmra.mxu1 %vm260_vm2, %v2111_v53 }
 0xddc   :  { %2600 = vmatprep.mubr.f32.mxu1 %v4102_v46 }
 0xe77   :  { %v1999_v19 = vpop.f32.mrf.mxu1 }
 0xe78   :  { %v2000_v22 = vadd.f32 %v1999_v19, %v4118_v20 }
 0xe79   :  { %v2001_v40 = vpop.f32.mrf.mxu1 }
 0xe7a   :  { %v2002_v4 = vadd.f32 %v2001_v40, %v3492_v48  ;;  %v2511_v40 = vld [vmem:[#allocation7 + $0xa8] sm:$0xff] }
 0xe8b   :  { %v2180_v51 = vpop.f32.mrf.mxu1 }
 0xe8c   :  { %v2185_v39 = vadd.f32 %v2180_v51, %v2000_v22  ;;  %v2513_v22 = vld [vmem:[#allocation7 + $0xb8] sm:$0xff]  ;;  %v2508_v51 = vld [vmem:[#allocation7 + $0x90] sm:$0xff] }
 0xe8d   :  { %v2182_v2 = vpop.f32.mrf.mxu1 }
 0xe8e   :  { %v2759_v49 = vmul.f32 -1.442695, %v2185_v39  ;;  %v2186_v45 = vadd.f32 %v2182_v2, %v2002_v4  ;;  %v2510_v39 = vld [vmem:[#allocation7 + $0xa0] sm:$0xff]  ;;  %v2507_v2 = vld [vmem:[#allocation7 + $0x88] sm:$0xff]  ;;  %v2505_v4 = vld [vmem:[#allocation7 + $0x78] sm:$0xff] }
 0xe90   :  { %2966 = vpow2.f32 %v2759_v49  ;;  %v2760_v35 = vmul.f32 -1.442695, %v2186_v45  ;;  %v2506_v49 = vld [vmem:[#allocation7 + $0x80] sm:$0xff] }
 0xe91   :  { %2968 = vtanh.f32 %v2186_v45  ;;  %v2503_v45 = vld [vmem:[#allocation7 + $0x68] sm:$0xff] }
 0xe9b   :  { %v2351_v63 = vpop.f32.mrf.mxu1 }
 0xe9c   :  { %v2358_v1 = vrot.slane %v2351_v63, 2  ;;  %v2504_v63 = vld [vmem:[#allocation7 + $0x70] sm:$0xff] }
 0xe9d   :  { %v2967_v29 = vpop.eup %2966  ;;  %v2353_v15 = vpop.f32.mrf.mxu1 }
 0xe9e   :  { %v2190_v7 = vadd.f32 1.0, %v2967_v29  ;;  %v2362_v8 = vadd.f32 %v2358_v1, %v4119_v58  ;;  %v2359_v25 = vrot.slane %v2353_v15, 2  ;;  %v2969_v54 = vpop.eup %2968  ;;  %v2378_v58 = vrot.slane %v3950_v41, 6  ;;  %v2502_v1 = vld [vmem:[#allocation7 + $0x60] sm:$0xff]  ;;  %v2500_v29 = vld [vmem:[#allocation7 + $0x50] sm:$0xff] }
 0xe9f   :  { %v2498_v15 = vld [vmem:[#allocation7 + $0x40] sm:$0xff] }
 0xea0   :  { %2970 = vrcp.f32 %v2190_v7  ;;  %v2763_v9 = vmul.f32 -1.442695, %v2362_v8  ;;  %v2363_v28 = vadd.f32 %v2359_v25, %v4120_v13  ;;  %v2501_v7 = vld [vmem:[#allocation7 + $0x58] sm:$0xff]  ;;  %v2499_v8 = vld [vmem:[#allocation7 + $0x48] sm:$0xff]  ;;  %v2496_v25 = vld [vmem:[#allocation7 + $0x30] sm:$0xff] }
 0xea2   :  { %2972 = vpow2.f32 %v2763_v9  ;;  %v2764_v38 = vmul.f32 -1.442695, %v2363_v28  ;;  %v2497_v9 = vld [vmem:[#allocation7 + $0x38] sm:$0xff] }
 0xea3   :  { %2974 = vtanh.f32 %v2363_v28  ;;  %v2493_v28 = vld [vmem:[#allocation7 + $0x18] sm:$0xff] }
 0xead   :  { %v2971_v55 = vpop.eup %2970 }
 0xeae   :  { %v2201_v57 = vmul.f32 %v2971_v55, %v2969_v54  ;;  %v2200_v37 = vmul.f32 %v2971_v55, %v3946_v42  ;;  %v2494_v54 = vld [vmem:[#allocation7 + $0x20] sm:$0xff]  ;;  %v2495_v55 = vld [vmem:[#allocation7 + $0x28] sm:$0xff] }
 0xeaf   :  { %v2973_v5 = vpop.eup %2972 }
 0xeb0   :  { %2203 = vrot.lane.b32.xlu0 %v2201_v57, %s3145_s3  ;;  %v2367_v27 = vadd.f32 1.0, %v2973_v5  ;;  %v2975_v30 = vpop.eup %2974  ;;  %v2491_v57 = vld [vmem:[#allocation7 + $0x8] sm:$0xff]  ;;  %v2492_v5 = vld [vmem:[#allocation7 + $0x10] sm:$0xff] }
 0xeb2   :  { %2976 = vrcp.f32 %v2367_v27  ;;  %v2490_v27 = vld [vmem:[#allocation7] sm:$0xff] }
 0xeb3   :  { %2978 = vpow2.f32 %v2760_v35 }
 0xeb4   :  { %2980 = vpow2.f32 %v2764_v38 }
 0xebf   :  { %v2977_v31 = vpop.eup %2976 }
 0xec0   :  { %v2381_v33 = vmul.f32 %v2977_v31, %v2975_v30  ;;  %v2380_v34 = vmul.f32 %v2977_v31, %v2378_v58  ;;  %v2979_v36 = vpop.eup %2978 }
 0xec1   :  { %v2197_v13 = vadd.f32 1.0, %v2979_v36  ;;  %v2981_v11 = vpop.eup %2980 }
 0xec2   :  { %2383 = vrot.lane.b32.xlu1 %v2381_v33, %s3145_s3  ;;  %v2374_v41 = vadd.f32 1.0, %v2981_v11  ;;  %v3147_v11 = vmov 1983009808  }
 0xec3   :  { %2982 = vrcp.f32 %v2197_v13 }
 0xed0   :  { %v2983_v12 = vpop.eup %2982 }
 0xf22   :  { %v2204_v61 = vpop.permute.xlu0 %2203 }
 0xf23   :  { %v3999_v10 = vadd.f32 %v2204_v61, %v2200_v37 }
 0xf25   :  { %2984 = vtanh.f32 %v3999_v10 }
 0xf26   :  { %2986 = vrcp.f32 %v2374_v41 }
 0xf32   :  { %v2985_v14 = vpop.eup %2984 }
 0xf33   :  { %v2208_v23 = vmul.f32 %v2985_v14, %v2983_v12  ;;  %v2987_v26 = vpop.eup %2986  ;;  %v2682_v12 = vunpack.c.l.s4 %v3147_v11  ;;  %v4122_v14 = vld [vmem:[#allocation13_spill] sm:$0xff] }
 0xf34   :  { %v2384_v16 = vpop.permute.xlu1 %2383 }
 0xf35   :  { %2210 = vrot.lane.b32.xlu0 %v2208_v23, %s3145_s3  ;;  %v2386_v17 = vadd.f32 %v2384_v16, %v2380_v34  ;;  %v2683_v16 = vunpack.c.0.s8 %v2682_v12 }
 0xf37   :  { %2988 = vtanh.f32 %v2386_v17  ;;  %v4123_v17 = vld [vmem:[#allocation14_spill] sm:$0xff] }
 0xf44   :  { %v2989_v42 = vpop.eup %2988 }
 0xf45   :  { %v2388_v52 = vmul.f32 %v2989_v42, %v2987_v26 }
 0xf47   :  { %v2390_v53 = vrot.slane %v2388_v52, 6 }
 0xf49   :  { %2391 = vrot.lane.b32.xlu1 %v2390_v53, %s3145_s3 }
 0xfa7   :  { %v2211_v19 = vpop.permute.xlu0 %2210 }
 0xfa8   :  { %2761 = vmatmul.mubr.msk.f32.vlgmr.msra.gmra.mxu0 %vm260_vm2, %v2211_v19 }
 0xfa9   :  { %2412 = vmatpush1.msra.mxu0 %v3855_v59  ;;  %2459 = vmatprep.mubr.f32.mxu0 %v4102_v46 }
 0xfaa   :  { %2413 = vmatprep.subr.mxu0 %v3859_v60 }
 0xfab   :  { %2414 = vmatpush1.msra.mxu0 %v3862_v6 }
 0xfac   :  { %2415 = vmatprep.subr.mxu0 %v3865_v50 }
 0xfad   :  { %2416 = vmatpush1.msra.mxu0 %v3868_v43 }
 0xfae   :  { %2417 = vmatprep.subr.mxu0 %v3871_v32 }
 0xfaf   :  { %2418 = vmatpush1.msra.mxu0 %v3874_v3 }
 0xfb0   :  { %2419 = vmatprep.subr.mxu0 %v3877_v47 }
 0xfb1   :  { %2420 = vmatpush1.msra.mxu0 %v3880_v0 }
 0xfb2   :  { %2421 = vmatprep.subr.mxu0 %v3883_v44 }
 0xfb3   :  { %2422 = vmatpush1.msra.mxu0 %v3886_v62 }
 0xfb4   :  { %2423 = vmatprep.subr.mxu0 %v3889_v18 }
 0xfb5   :  { %2424 = vmatpush1.msra.mxu0 %v3892_v21 }
 0xfb6   :  { %2425 = vmatprep.subr.mxu0 %v3895_v56 }
 0xfb7   :  { %2426 = vmatpush1.msra.mxu0 %v3898_v24 }
 0xfb8   :  { %2779 = vmatprep.subr.mxu0 %v4102_v46 }
 0xfbb   :  { %v2392_v59 = vpop.permute.xlu1 %2391 }
 0xfbc   :  { %2765 = vmatmul.mubr.msk.f32.vlgmr.msra.gmra.mxu0 %vm260_vm2, %v2392_v59 }
 0xfbd   :  { %2780 = vmatpush3.msra.mxu0 %v2513_v22  ;;  %2795 = vmatprep.mubr.msk.f32.mxu0 %vm3146_vm3, %v4102_v46 }
 0xfbe   :  { %2781 = vmatprep.subr.mxu0 %v4102_v46 }
 0xfbf   :  { %2782 = vmatpush3.msra.mxu0 %v2510_v39 }
 0xfc0   :  { %2783 = vmatprep.subr.mxu0 %v4102_v46 }
 0xfc1   :  { %2784 = vmatpush3.msra.mxu0 %v2507_v2 }
 0xfc2   :  { %2785 = vmatprep.subr.mxu0 %v4102_v46 }
 0xfc3   :  { %2786 = vmatpush3.msra.mxu0 %v2504_v63 }
 0xfc4   :  { %2787 = vmatprep.subr.mxu0 %v4102_v46 }
 0xfc5   :  { %2788 = vmatpush3.msra.mxu0 %v2501_v7 }
 0xfc6   :  { %2789 = vmatprep.subr.mxu0 %v4102_v46 }
 0xfc7   :  { %2790 = vmatpush3.msra.mxu0 %v2498_v15 }
 0xfc8   :  { %2791 = vmatprep.subr.mxu0 %v4102_v46 }
 0xfc9   :  { %2792 = vmatpush3.msra.mxu0 %v2495_v55 }
 0xfca   :  { %2793 = vmatprep.subr.mxu0 %v4102_v46  ;;  %v4121_v46 = vld [vmem:[#allocation12_spill] sm:$0xff] }
 0xfcb   :  { %2794 = vmatpush3.msra.mxu0 %v2492_v5  ;;  %v2526_v61 = vsub.s32 2, %v4121_v46 }
0x1068   :  { %v2280_v60 = vpop.f32.mrf.mxu0 }
0x1069   :  { %v2281_v50 = vadd.f32 %v2280_v60, %v4118_v20  ;;  %v2512_v20 = vld [vmem:[#allocation7 + $0xb0] sm:$0xff] }
0x106a   :  { %v2282_v6 = vpop.f32.mrf.mxu0  ;;  %2552 = vmatprep.subr.mxu1 %v2512_v20 }
0x106b   :  { %v2283_v0 = vadd.f32 %v2282_v6, %v3492_v48  ;;  %v2509_v48 = vld [vmem:[#allocation7 + $0x98] sm:$0xff]  ;;  %2553 = vmatpush1.msra.mxu1 %v2511_v40  ;;  %v2686_v6 = vsub.s32 %v2683_v16, %v4121_v46 }
0x106c   :  { %2554 = vmatprep.subr.mxu1 %v2509_v48 }
0x106d   :  { %2555 = vmatpush1.msra.mxu1 %v2508_v51 }
0x106e   :  { %2556 = vmatprep.subr.mxu1 %v2506_v49 }
0x106f   :  { %2557 = vmatpush1.msra.mxu1 %v2505_v4 }
0x1070   :  { %2558 = vmatprep.subr.mxu1 %v2503_v45 }
0x1071   :  { %2559 = vmatpush1.msra.mxu1 %v2502_v1 }
0x1072   :  { %2560 = vmatprep.subr.mxu1 %v2500_v29 }
0x1073   :  { %2561 = vmatpush1.msra.mxu1 %v2499_v8 }
0x1074   :  { %2562 = vmatprep.subr.mxu1 %v2497_v9 }
0x1075   :  { %2563 = vmatpush1.msra.mxu1 %v2496_v25 }
0x1076   :  { %2564 = vmatprep.subr.mxu1 %v2494_v54 }
0x1077   :  { %2565 = vmatpush1.msra.mxu1 %v2493_v28 }
0x1078   :  { %2566 = vmatprep.subr.mxu1 %v2491_v57 }
0x1079   :  { %2567 = vmatpush1.msra.mxu1 %v2490_v27 }
0x107c   :  { %v2461_v43 = vpop.f32.mrf.mxu0 }
0x107d   :  { %v2466_v32 = vadd.f32 %v2461_v43, %v2281_v50 }
0x107e   :  { %v2463_v47 = vpop.f32.mrf.mxu0 }
0x107f   :  { %v2766_v3 = vmul.f32 -1.442695, %v2466_v32  ;;  %v4025_v44 = vadd.f32 %v2463_v47, %v2283_v0 }
0x1081   :  { %2990 = vpow2.f32 %v2766_v3  ;;  %v2767_v30 = vmul.f32 -1.442695, %v4025_v44 }
0x1082   :  { %2992 = vtanh.f32 %v4025_v44 }
0x108e   :  { %v2991_v62 = vpop.eup %2990 }
0x108f   :  { %v2471_v18 = vadd.f32 1.0, %v2991_v62  ;;  %v2993_v21 = vpop.eup %2992 }
0x1091   :  { %2994 = vrcp.f32 %v2471_v18 }
0x1092   :  { %2996 = vpow2.f32 %v2767_v30 }
0x109e   :  { %v4028_v56 = vpop.eup %2994 }
0x109f   :  { %v2482_v24 = vmul.f32 %v4028_v56, %v2993_v21  ;;  %v2997_v58 = vpop.eup %2996  ;;  %v2481_v33 = vmul.f32 %v4028_v56, %v3999_v10  ;;  %v2514_v10 = vld [vmem:[%s4064_s8] sm:$0x7] }
0x10a0   :  { %v2478_v31 = vadd.f32 1.0, %v2997_v58  ;;  %v2519_v41 = vrot.slane %v2514_v10, %v4122_v14  ;;  %v2527_v23 = vrot.slane %v2514_v10, %v2526_v61  ;;  %v2523_v26 = vrot.slane %v2514_v10, %v4123_v17 }
0x10a1   :  { %2484 = vrot.lane.b32.xlu0 %v2482_v24, %s3145_s3 }
0x10a2   :  { %2998 = vrcp.f32 %v2478_v31 }
0x10af   :  { %v2999_v36 = vpop.eup %2998 }
0x1113   :  { %v2485_v34 = vpop.permute.xlu0 %2484 }
0x1114   :  { %v2487_v35 = vadd.f32 %v2485_v34, %v2481_v33 }
0x1116   :  { %3000 = vtanh.f32 %v2487_v35 }
0x1123   :  { %v3001_v38 = vpop.eup %3000 }
0x1124   :  { %v2489_v13 = vmul.f32 %v3001_v38, %v2999_v36 }
0x1126   :  { %2532 = vrot.lane.b32.xlu1 %v2489_v13, %s3145_s3 }
0x1198   :  { %v2533_v37 = vpop.permute.xlu1 %2532 }
0x1199   :  { %2768 = vmatmul.mubr.msk.f32.vlgmr.msra.gmra.mxu1 %vm260_vm2, %v2533_v37  ;;  %2796 = vmatmul.mubr.msk.f32.vlgmr.msra.gmra.mxu0 %vm260_vm2, %v2533_v37 }
0x1259   :  { %v2602_v42 = vpop.f32.mrf.mxu1  ;;  %v2673_v52 = vpop.f32.mrf.mxu0 }
0x125a   :  { %v2603_v59 = vadd.f32 %v2602_v42, %v2519_v41  ;;  %v2674_v60 = vadd.f32 %v2673_v52, %v2527_v23 }
0x125b   :  { %v2604_v53 = vpop.f32.mrf.mxu1  ;;  %v2797_v19 = vpop.f32.mrf.mxu0 }
0x125c   :  { %v2605_v50 = vadd.f32 %v2604_v53, %v2523_v26  ;;  %v2694_v32 = vrot.slane %v2674_v60, %v2686_v6 }
0x125e   :  { %v2680_v43 = vcombine.low %v2603_v59, %v2605_v50 }
0x1260   :  { %v2687_v3 = vrot.slane %v2680_v43, %v2686_v6 }
0x1262   :  { %v2695_v47 = vcombine.low %v2687_v3, %v2694_v32 }
0x1264   :  { %2702 = vst.msk [vmem:[%s4065_s9] sm:$0x3f] %vm2701_vm8, %v2695_v47 }
0x1265   :  { %2707 = vsyncpa [#allocation3], 1 }
0x1266   :  { %2708 = vsyncpa [#allocation5], 1 }
0x1267   :  { %2709 = vsyncpa [#allocation8], 1 }

</bundles_post_ra>
